<compile_context>
chip_gen: v6e
topology: v6e:2x2x1
jax: 0.10.0
libtpu: 0.0.40
codegen_flags: <defaults>
</compile_context>

<pallas_src>
import functools
import math

import jax
import jax.numpy as jnp
from jax.experimental import pallas as pl
from jax.experimental.pallas import tpu as pltpu


# ----------------------------- helpers ------------------------------------- #

def _tile(dim, pref):
    """Pick a tile size: `pref` if it divides `dim`, else the full dim."""
    if dim >= pref and dim % pref == 0:
        return pref
    return dim


_VMEM_LIMIT = 32 * 1024 * 1024  # safe on v5e/v6e/v7x; raises v5e's 16MiB default


# ----------------------- fused LayerNorm + matmul --------------------------- #

def _ln_matmul_kernel(x_ref, g_ref, b_ref, w_ref, wb_ref, o_ref, *, eps,
                      activation):
    # LayerNorm over the full hidden dim (K is untiled so stats are exact),
    # then bf16 MXU matmul with f32 accumulation, bias, optional GELU.
    x = x_ref[...].astype(jnp.float32)
    mu = jnp.mean(x, axis=-1, keepdims=True)
    xc = x - mu
    var = jnp.mean(xc * xc, axis=-1, keepdims=True)
    h = xc * jax.lax.rsqrt(var + eps) * g_ref[...] + b_ref[...]
    y = jnp.dot(h.astype(jnp.bfloat16), w_ref[...],
                preferred_element_type=jnp.float32) + wb_ref[...]
    if activation == "gelu":
        # TODO(synk): ESM-2 uses exact erf-GELU; tanh-approx GELU is used here
        # for a guaranteed Mosaic lowering (difference ~1e-3).
        y = jax.nn.gelu(y, approximate=True)
    o_ref[...] = y.astype(o_ref.dtype)


def ln_linear(x2d, gamma, beta, w, bias, activation=None,
              out_dtype=jnp.bfloat16, eps=1e-5, tm_pref=256, tn_pref=512):
    M, K = x2d.shape
    N = w.shape[1]
    tm = _tile(M, tm_pref)
    tn = _tile(N, tn_pref)
    flops = 2 * M * N * K
    bytes_accessed = 4 * M * K + 2 * K * N + 4 * (2 * K + N) + 2 * M * N
    return pl.pallas_call(
        functools.partial(_ln_matmul_kernel, eps=eps, activation=activation),
        out_shape=jax.ShapeDtypeStruct((M, N), out_dtype),
        grid=(M // tm, N // tn),
        in_specs=[
            pl.BlockSpec((tm, K), lambda i, j: (i, 0)),
            pl.BlockSpec((1, K), lambda i, j: (0, 0)),
            pl.BlockSpec((1, K), lambda i, j: (0, 0)),
            pl.BlockSpec((K, tn), lambda i, j: (0, j)),
            pl.BlockSpec((1, tn), lambda i, j: (0, j)),
        ],
        out_specs=pl.BlockSpec((tm, tn), lambda i, j: (i, j)),
        compiler_params=pltpu.CompilerParams(
            dimension_semantics=("parallel", "parallel"),
            vmem_limit_bytes=_VMEM_LIMIT),
        cost_estimate=pl.CostEstimate(
            flops=flops,
            transcendentals=M * N if activation == "gelu" else 0,
            bytes_accessed=bytes_accessed),
    )(x2d, gamma.reshape(1, K), beta.reshape(1, K), w, bias.reshape(1, N))


# ------------------ K-tiled matmul + bias + residual ------------------------ #

def _matmul_bias_res_kernel(x_ref, w_ref, b_ref, r_ref, o_ref, acc_ref):
    @pl.when(pl.program_id(2) == 0)
    def _init():
        acc_ref[...] = jnp.zeros_like(acc_ref)

    acc_ref[...] += jnp.dot(x_ref[...], w_ref[...],
                            preferred_element_type=jnp.float32)

    @pl.when(pl.program_id(2) == pl.num_programs(2) - 1)
    def _finalize():
        o_ref[...] = (acc_ref[...] + b_ref[...]
                      + r_ref[...].astype(jnp.float32)).astype(o_ref.dtype)


def matmul_bias_residual(x2d, w, bias, residual, out_dtype=jnp.float32,
                         tm_pref=256, tn_pref=512, tk_pref=512):
    M, K = x2d.shape
    N = w.shape[1]
    tm = _tile(M, tm_pref)
    tn = _tile(N, tn_pref)
    tk = _tile(K, tk_pref)
    flops = 2 * M * N * K
    bytes_accessed = 2 * M * K + 2 * K * N + 4 * N + 4 * M * N + 4 * M * N
    return pl.pallas_call(
        _matmul_bias_res_kernel,
        out_shape=jax.ShapeDtypeStruct((M, N), out_dtype),
        grid=(M // tm, N // tn, K // tk),
        in_specs=[
            pl.BlockSpec((tm, tk), lambda i, j, k: (i, k)),
            pl.BlockSpec((tk, tn), lambda i, j, k: (k, j)),
            pl.BlockSpec((1, tn), lambda i, j, k: (0, j)),
            pl.BlockSpec((tm, tn), lambda i, j, k: (i, j)),
        ],
        out_specs=pl.BlockSpec((tm, tn), lambda i, j, k: (i, j)),
        scratch_shapes=[pltpu.VMEM((tm, tn), jnp.float32)],
        compiler_params=pltpu.CompilerParams(
            dimension_semantics=("parallel", "parallel", "arbitrary"),
            vmem_limit_bytes=_VMEM_LIMIT),
        cost_estimate=pl.CostEstimate(
            flops=flops, transcendentals=0, bytes_accessed=bytes_accessed),
    )(x2d, w, bias.reshape(1, N), residual)


# --------------------- fused rotary + attention kernel ---------------------- #

def _attention_kernel(qkv_ref, cos_ref, sins_ref, o_ref, *, n_heads, d_model,
                      scale):
    D = d_model
    Dh = D // n_heads
    qkv = qkv_ref[0]                       # (L, 3D) bf16, lane-dense
    cos = cos_ref[...]                     # (L, Dh) f32
    sins = sins_ref[...]                   # (L, Dh) f32, sign-folded sin

    def rope(x):
        # rotate_half via in-lane shuffle; sign is folded into `sins`.
        # NOTE: at real Dh (=64) this could use pltpu.roll on the XLU slot.
        xr = jnp.concatenate([x[:, Dh // 2:], x[:, :Dh // 2]], axis=-1)
        return x * cos + xr * sins

    outs = []
    for h in range(n_heads):               # static unroll over heads
        qh = qkv[:, h * Dh:(h + 1) * Dh].astype(jnp.float32)
        kh = qkv[:, D + h * Dh:D + (h + 1) * Dh].astype(jnp.float32)
        vh = qkv[:, 2 * D + h * Dh:2 * D + (h + 1) * Dh]       # bf16
        qh = (rope(qh) * scale).astype(jnp.bfloat16)
        kh = rope(kh).astype(jnp.bfloat16)
        # Contract last axis of both operands directly (no k.T materialization).
        s = jax.lax.dot_general(qh, kh, (((1,), (1,)), ((), ())),
                                preferred_element_type=jnp.float32)   # (L, L)
        m = jnp.max(s, axis=-1, keepdims=True)
        p = jnp.exp(s - m)
        l = jnp.sum(p, axis=-1, keepdims=True)
        o = jnp.dot(p.astype(jnp.bfloat16), vh,
                    preferred_element_type=jnp.float32)               # (L, Dh)
        outs.append(o * pl.reciprocal(l, approx=True))
    o_ref[0] = jnp.concatenate(outs, axis=-1).astype(o_ref.dtype)


def attention(qkv, cos, sins, n_heads):
    B, L, threeD = qkv.shape
    D = threeD // 3
    Dh = D // n_heads
    scale = 1.0 / math.sqrt(Dh)
    return pl.pallas_call(
        functools.partial(_attention_kernel, n_heads=n_heads, d_model=D,
                          scale=scale),
        out_shape=jax.ShapeDtypeStruct((B, L, D), jnp.bfloat16),
        grid=(B,),
        in_specs=[
            pl.BlockSpec((1, L, threeD), lambda b: (b, 0, 0)),
            pl.BlockSpec((L, Dh), lambda b: (0, 0)),
            pl.BlockSpec((L, Dh), lambda b: (0, 0)),
        ],
        out_specs=pl.BlockSpec((1, L, D), lambda b: (b, 0, 0)),
        compiler_params=pltpu.CompilerParams(
            dimension_semantics=("parallel",),
            vmem_limit_bytes=_VMEM_LIMIT),
        cost_estimate=pl.CostEstimate(
            flops=4 * B * n_heads * L * L * Dh,
            transcendentals=B * n_heads * L * L,
            bytes_accessed=2 * B * L * (threeD + D)),
    )(qkv, cos, sins)


# ------------------------- final LayerNorm (row-tiled) ---------------------- #

def _layernorm_kernel(x_ref, g_ref, b_ref, o_ref, *, eps):
    x = x_ref[...].astype(jnp.float32)
    mu = jnp.mean(x, axis=-1, keepdims=True)
    xc = x - mu
    var = jnp.mean(xc * xc, axis=-1, keepdims=True)
    o_ref[...] = (xc * jax.lax.rsqrt(var + eps) * g_ref[...]
                  + b_ref[...]).astype(o_ref.dtype)


def layernorm(x2d, gamma, beta, eps=1e-5, tm_pref=256):
    M, D = x2d.shape
    tm = _tile(M, tm_pref)
    return pl.pallas_call(
        functools.partial(_layernorm_kernel, eps=eps),
        out_shape=jax.ShapeDtypeStruct((M, D), jnp.float32),
        grid=(M // tm,),
        in_specs=[
            pl.BlockSpec((tm, D), lambda i: (i, 0)),
            pl.BlockSpec((1, D), lambda i: (0, 0)),
            pl.BlockSpec((1, D), lambda i: (0, 0)),
        ],
        out_specs=pl.BlockSpec((tm, D), lambda i: (i, 0)),
        compiler_params=pltpu.CompilerParams(
            dimension_semantics=("parallel",)),
    )(x2d, gamma.reshape(1, D), beta.reshape(1, D))


# ------------------------------- JAX glue ----------------------------------- #

def rotary_tables(L, Dh):
    inv_freq = 1.0 / (10000.0 ** (jnp.arange(0, Dh, 2, dtype=jnp.float32) / Dh))
    t = jnp.arange(L, dtype=jnp.float32)
    freqs = jnp.einsum("i,j->ij", t, inv_freq)                 # (L, Dh/2)
    cos = jnp.cos(jnp.concatenate([freqs, freqs], axis=-1))    # (L, Dh)
    sin_h = jnp.sin(freqs)
    sin_signed = jnp.concatenate([-sin_h, sin_h], axis=-1)     # folds rotate_half sign
    return cos, sin_signed


def esm2_forward(params, tokens, *, n_heads):
    B, L = tokens.shape
    D = params["embed"].shape[1]
    Dh = D // n_heads
    cos, sins = rotary_tables(L, Dh)

    # TODO(synk): string tokenizer (batch_converter), pretrained checkpoint and
    # padding-mask / token-dropout handling have no Pallas equivalent here;
    # token ids are consumed directly and the embedding gather stays in XLA.
    x = params["embed"][tokens].reshape(B * L, D)              # f32 [M, D]

    for lp in params["layers"]:
        # --- self-attention block (pre-LN fused into fused-QKV matmul) ---
        qkv = ln_linear(x, lp["ln1_g"], lp["ln1_b"], lp["wqkv"], lp["bqkv"])
        a = attention(qkv.reshape(B, L, 3 * D), cos, sins, n_heads)
        x = matmul_bias_residual(a.reshape(B * L, D), lp["wo"], lp["bo"], x)

        # --- feed-forward block (pre-LN + GELU fused; residual fused in w2) ---
        h = ln_linear(x, lp["ln2_g"], lp["ln2_b"], lp["w1"], lp["b1"],
                      activation="gelu")
        x = matmul_bias_residual(h, lp["w2"], lp["b2"], x)

    # emb_layer_norm_after -> results['representations'][last layer]
    x = layernorm(x, params["lnf_g"], params["lnf_b"])
    return x.reshape(B, L, D)


def init_params(key, vocab, d, ffn, n_layers):
    def dense(k, fan_in, fan_out):
        w = (jax.random.normal(k, (fan_in, fan_out), jnp.float32)
             * (1.0 / math.sqrt(fan_in)))
        return w.astype(jnp.bfloat16)          # weights streamed as bf16

    keys = jax.random.split(key, 1 + n_layers)
    params = {
        "embed": jax.random.normal(keys[0], (vocab, d), jnp.float32) * 0.02,
        "lnf_g": jnp.ones((d,), jnp.float32),
        "lnf_b": jnp.zeros((d,), jnp.float32),
        "layers": [],
    }
    for li in range(n_layers):
        ks = jax.random.split(keys[1 + li], 6)
        # q/k/v projections stored pre-concatenated (done once at load time
        # for a real checkpoint): columns [0:D]=q, [D:2D]=k, [2D:3D]=v.
        wqkv = jnp.concatenate(
            [dense(ks[0], d, d), dense(ks[1], d, d), dense(ks[2], d, d)],
            axis=1)
        params["layers"].append({
            "ln1_g": jnp.ones((d,), jnp.float32),
            "ln1_b": jnp.zeros((d,), jnp.float32),
            "wqkv": wqkv, "bqkv": jnp.zeros((3 * d,), jnp.float32),
            "wo": dense(ks[3], d, d), "bo": jnp.zeros((d,), jnp.float32),
            "ln2_g": jnp.ones((d,), jnp.float32),
            "ln2_b": jnp.zeros((d,), jnp.float32),
            "w1": dense(ks[4], d, ffn), "b1": jnp.zeros((ffn,), jnp.float32),
            "w2": dense(ks[5], ffn, d), "b2": jnp.zeros((d,), jnp.float32),
        })
    return params


if __name__ == "__main__":
    # Small synthetic config (real ESM-2 t33: 33 layers, D=1280, H=20, FFN=5120).
    B, L = 2, 8
    VOCAB, D, HEADS, FFN, NLAYERS = 33, 32, 4, 128, 2

    key = jax.random.PRNGKey(0)
    k_params, k_tok = jax.random.split(key)
    params = init_params(k_params, VOCAB, D, FFN, NLAYERS)

    # "batch_converter" output stand-in: integer token ids in the ESM alphabet.
    tokens = jax.random.randint(k_tok, (B, L), 0, VOCAB, dtype=jnp.int32)

    fwd = jax.jit(functools.partial(esm2_forward, n_heads=HEADS))
    reps = fwd(params, tokens)          # token_representations: [B, L, D]
    jax.block_until_ready(reps)
    assert reps.shape == (B, L, D)
    print("KERNEL_OK")
</pallas_src>

<mosaic_0001>
module attributes {stable_mosaic.version = 11 : i64} {
  func.func @_ln_matmul_kernel(%arg0: i32, %arg1: i32, %arg2: memref<16x32xf32, #tpu.memory_space<vmem>>, %arg3: memref<1x32xf32, #tpu.memory_space<vmem>>, %arg4: memref<1x32xf32, #tpu.memory_space<vmem>>, %arg5: memref<32x128xbf16, #tpu.memory_space<vmem>>, %arg6: memref<1x128xf32, #tpu.memory_space<vmem>>, %arg7: memref<16x128xbf16, #tpu.memory_space<vmem>>) attributes {dimension_semantics = [#tpu.dimension_semantics<parallel>, #tpu.dimension_semantics<parallel>], iteration_bounds = array<i64: 1, 1>, scalar_prefetch = 0 : i64, scratch_operands = 0 : i64, tpu.core_type = #tpu.core_type<tc>, window_params = [{transform_indices = @transform_0, window_bounds = array<i64: 16, 32>}, {pipeline_mode = #tpu.pipeline_mode<synchronous>, transform_indices = @transform_1, window_bounds = array<i64: 1, 32>}, {pipeline_mode = #tpu.pipeline_mode<synchronous>, transform_indices = @transform_2, window_bounds = array<i64: 1, 32>}, {transform_indices = @transform_3, window_bounds = array<i64: 32, 128>}, {transform_indices = @transform_4, window_bounds = array<i64: 1, 128>}, {transform_indices = @transform_5, window_bounds = array<i64: 16, 128>}]} {
    %c0 = arith.constant 0 : index
    %c0_0 = arith.constant 0 : index
    %0 = vector.load %arg2[%c0, %c0_0] : memref<16x32xf32, #tpu.memory_space<vmem>>, vector<16x32xf32>
    %cst = arith.constant dense<0.000000e+00> : vector<16xf32>
    %1 = vector.multi_reduction <add>, %0, %cst [1] : vector<16x32xf32> to vector<16xf32>
    %2 = vector.shape_cast %1 : vector<16xf32> to vector<16x1xf32>
    %cst_1 = arith.constant 3.200000e+01 : f32
    %3 = vector.broadcast %cst_1 : f32 to vector<16x1xf32>
    %4 = arith.divf %2, %3 : vector<16x1xf32>
    %5 = vector.broadcast %4 : vector<16x1xf32> to vector<16x32xf32>
    %6 = arith.subf %0, %5 : vector<16x32xf32>
    %7 = arith.mulf %6, %6 : vector<16x32xf32>
    %cst_2 = arith.constant dense<0.000000e+00> : vector<16xf32>
    %8 = vector.multi_reduction <add>, %7, %cst_2 [1] : vector<16x32xf32> to vector<16xf32>
    %9 = vector.shape_cast %8 : vector<16xf32> to vector<16x1xf32>
    %cst_3 = arith.constant 3.200000e+01 : f32
    %10 = vector.broadcast %cst_3 : f32 to vector<16x1xf32>
    %11 = arith.divf %9, %10 : vector<16x1xf32>
    %cst_4 = arith.constant 9.99999974E-6 : f32
    %12 = vector.broadcast %cst_4 : f32 to vector<16x1xf32>
    %13 = arith.addf %11, %12 : vector<16x1xf32>
    %14 = math.rsqrt %13 : vector<16x1xf32>
    %15 = vector.broadcast %14 : vector<16x1xf32> to vector<16x32xf32>
    %16 = arith.mulf %6, %15 : vector<16x32xf32>
    %c0_5 = arith.constant 0 : index
    %c0_6 = arith.constant 0 : index
    %17 = vector.load %arg3[%c0_5, %c0_6] : memref<1x32xf32, #tpu.memory_space<vmem>>, vector<1x32xf32>
    %18 = vector.broadcast %17 : vector<1x32xf32> to vector<16x32xf32>
    %19 = arith.mulf %16, %18 : vector<16x32xf32>
    %c0_7 = arith.constant 0 : index
    %c0_8 = arith.constant 0 : index
    %20 = vector.load %arg4[%c0_7, %c0_8] : memref<1x32xf32, #tpu.memory_space<vmem>>, vector<1x32xf32>
    %21 = vector.broadcast %20 : vector<1x32xf32> to vector<16x32xf32>
    %22 = arith.addf %19, %21 : vector<16x32xf32>
    %23 = arith.truncf %22 : vector<16x32xf32> to vector<16x32xbf16>
    %c0_9 = arith.constant 0 : index
    %c0_10 = arith.constant 0 : index
    %24 = vector.load %arg5[%c0_9, %c0_10] : memref<32x128xbf16, #tpu.memory_space<vmem>>, vector<32x128xbf16>
    %cst_11 = arith.constant dense<0.000000e+00> : vector<16x128xf32>
    %25 = tpu.matmul %23, %24, %cst_11 {dimension_numbers = #tpu.dot_dimension_numbers<[1], [0], [0], [1], [0, 0, 1, 1], [], []>} : vector<16x32xbf16>, vector<32x128xbf16>, vector<16x128xf32> -> vector<16x128xf32>
    %c0_12 = arith.constant 0 : index
    %c0_13 = arith.constant 0 : index
    %26 = vector.load %arg6[%c0_12, %c0_13] : memref<1x128xf32, #tpu.memory_space<vmem>>, vector<1x128xf32>
    %27 = vector.broadcast %26 : vector<1x128xf32> to vector<16x128xf32>
    %28 = arith.addf %25, %27 : vector<16x128xf32>
    %29 = arith.mulf %28, %28 : vector<16x128xf32>
    %30 = arith.mulf %28, %29 : vector<16x128xf32>
    %cst_14 = arith.constant 4.471500e-02 : f32
    %31 = vector.broadcast %cst_14 : f32 to vector<16x128xf32>
    %32 = arith.mulf %31, %30 : vector<16x128xf32>
    %33 = arith.addf %28, %32 : vector<16x128xf32>
    %cst_15 = arith.constant 0.797884583 : f32
    %34 = vector.broadcast %cst_15 : f32 to vector<16x128xf32>
    %35 = arith.mulf %34, %33 : vector<16x128xf32>
    %36 = math.tanh %35 : vector<16x128xf32>
    %cst_16 = arith.constant 1.000000e+00 : f32
    %37 = vector.broadcast %cst_16 : f32 to vector<16x128xf32>
    %38 = arith.addf %37, %36 : vector<16x128xf32>
    %cst_17 = arith.constant 5.000000e-01 : f32
    %39 = vector.broadcast %cst_17 : f32 to vector<16x128xf32>
    %40 = arith.mulf %39, %38 : vector<16x128xf32>
    %41 = arith.mulf %28, %40 : vector<16x128xf32>
    %42 = arith.truncf %41 : vector<16x128xf32> to vector<16x128xbf16>
    %c0_18 = arith.constant 0 : index
    %c0_19 = arith.constant 0 : index
    %43 = vector.load %arg7[%c0_18, %c0_19] : memref<16x128xbf16, #tpu.memory_space<vmem>>, vector<16x128xbf16>
    tpu.vector_store %arg7[%c0_18, %c0_19], %42 {strides = array<i32>} : memref<16x128xbf16, #tpu.memory_space<vmem>>, vector<16x128xbf16>,
    return
  }
  func.func @transform_0(%arg0: i32, %arg1: i32) -> (i32, i32) {
    %c0_i32 = arith.constant 0 : i32
    %c0_i32_0 = arith.constant 0 : i32
    return %arg0, %c0_i32 : i32, i32
  }
  func.func @transform_1(%arg0: i32, %arg1: i32) -> (i32, i32) {
    %c0_i32 = arith.constant 0 : i32
    %c0_i32_0 = arith.constant 0 : i32
    %c0_i32_1 = arith.constant 0 : i32
    return %c0_i32, %c0_i32_0 : i32, i32
  }
  func.func @transform_2(%arg0: i32, %arg1: i32) -> (i32, i32) {
    %c0_i32 = arith.constant 0 : i32
    %c0_i32_0 = arith.constant 0 : i32
    %c0_i32_1 = arith.constant 0 : i32
    return %c0_i32, %c0_i32_0 : i32, i32
  }
  func.func @transform_3(%arg0: i32, %arg1: i32) -> (i32, i32) {
    %c0_i32 = arith.constant 0 : i32
    %c0_i32_0 = arith.constant 0 : i32
    return %c0_i32, %arg1 : i32, i32
  }
  func.func @transform_4(%arg0: i32, %arg1: i32) -> (i32, i32) {
    %c0_i32 = arith.constant 0 : i32
    %c0_i32_0 = arith.constant 0 : i32
    return %c0_i32, %arg1 : i32, i32
  }
  func.func @transform_5(%arg0: i32, %arg1: i32) -> (i32, i32) {
    %c0_i32 = arith.constant 0 : i32
    return %arg0, %arg1 : i32, i32
  }
}

module attributes {stable_mosaic.version = 11 : i64} {
  func.func @_matmul_bias_res_kernel(%arg0: i32, %arg1: i32, %arg2: i32, %arg3: memref<16x32xbf16, #tpu.memory_space<vmem>>, %arg4: memref<32x32xbf16, #tpu.memory_space<vmem>>, %arg5: memref<1x32xf32, #tpu.memory_space<vmem>>, %arg6: memref<16x32xf32, #tpu.memory_space<vmem>>, %arg7: memref<16x32xf32, #tpu.memory_space<vmem>>, %arg8: memref<16x32xf32, #tpu.memory_space<vmem>>) attributes {dimension_semantics = [#tpu.dimension_semantics<parallel>, #tpu.dimension_semantics<parallel>, #tpu.dimension_semantics<arbitrary>], iteration_bounds = array<i64: 1, 1, 1>, scalar_prefetch = 0 : i64, scratch_operands = 1 : i64, tpu.core_type = #tpu.core_type<tc>, window_params = [{transform_indices = @transform_0, window_bounds = array<i64: 16, 32>}, {transform_indices = @transform_1, window_bounds = array<i64: 32, 32>}, {transform_indices = @transform_2, window_bounds = array<i64: 1, 32>}, {transform_indices = @transform_3, window_bounds = array<i64: 16, 32>}, {transform_indices = @transform_4, window_bounds = array<i64: 16, 32>}]} {
    %c0_i32 = arith.constant 0 : i32
    %0 = arith.cmpi eq, %arg2, %c0_i32 : i32
    %1 = arith.extui %0 : i1 to i32
    %c0_i32_0 = arith.constant 0 : i32
    %2 = arith.cmpi ne, %1, %c0_i32_0 : i32
    scf.if %2 {
      %cst_10 = arith.constant 0.000000e+00 : f32
      %12 = vector.broadcast %cst_10 : f32 to vector<16x32xf32>
      %c0_11 = arith.constant 0 : index
      %c0_12 = arith.constant 0 : index
      %13 = vector.load %arg8[%c0_11, %c0_12] : memref<16x32xf32, #tpu.memory_space<vmem>>, vector<16x32xf32>
      tpu.vector_store %arg8[%c0_11, %c0_12], %12 {strides = array<i32>} : memref<16x32xf32, #tpu.memory_space<vmem>>, vector<16x32xf32>,
    } else {
    }
    %c0 = arith.constant 0 : index
    %c0_1 = arith.constant 0 : index
    %3 = vector.load %arg8[%c0, %c0_1] : memref<16x32xf32, #tpu.memory_space<vmem>>, vector<16x32xf32>
    %c0_2 = arith.constant 0 : index
    %c0_3 = arith.constant 0 : index
    %4 = vector.load %arg3[%c0_2, %c0_3] : memref<16x32xbf16, #tpu.memory_space<vmem>>, vector<16x32xbf16>
    %c0_4 = arith.constant 0 : index
    %c0_5 = arith.constant 0 : index
    %5 = vector.load %arg4[%c0_4, %c0_5] : memref<32x32xbf16, #tpu.memory_space<vmem>>, vector<32x32xbf16>
    %cst = arith.constant dense<0.000000e+00> : vector<16x32xf32>
    %6 = tpu.matmul %4, %5, %cst {dimension_numbers = #tpu.dot_dimension_numbers<[1], [0], [0], [1], [0, 0, 1, 1], [], []>} : vector<16x32xbf16>, vector<32x32xbf16>, vector<16x32xf32> -> vector<16x32xf32>
    %7 = arith.addf %3, %6 : vector<16x32xf32>
    %c0_6 = arith.constant 0 : index
    %c0_7 = arith.constant 0 : index
    %8 = vector.load %arg8[%c0_6, %c0_7] : memref<16x32xf32, #tpu.memory_space<vmem>>, vector<16x32xf32>
    tpu.vector_store %arg8[%c0_6, %c0_7], %7 {strides = array<i32>} : memref<16x32xf32, #tpu.memory_space<vmem>>, vector<16x32xf32>,
    %c0_i32_8 = arith.constant 0 : i32
    %9 = arith.cmpi eq, %arg2, %c0_i32_8 : i32
    %10 = arith.extui %9 : i1 to i32
    %c0_i32_9 = arith.constant 0 : i32
    %11 = arith.cmpi ne, %10, %c0_i32_9 : i32
    scf.if %11 {
      %c0_10 = arith.constant 0 : index
      %c0_11 = arith.constant 0 : index
      %12 = vector.load %arg8[%c0_10, %c0_11] : memref<16x32xf32, #tpu.memory_space<vmem>>, vector<16x32xf32>
      %c0_12 = arith.constant 0 : index
      %c0_13 = arith.constant 0 : index
      %13 = vector.load %arg5[%c0_12, %c0_13] : memref<1x32xf32, #tpu.memory_space<vmem>>, vector<1x32xf32>
      %14 = vector.broadcast %13 : vector<1x32xf32> to vector<16x32xf32>
      %15 = arith.addf %12, %14 : vector<16x32xf32>
      %c0_14 = arith.constant 0 : index
      %c0_15 = arith.constant 0 : index
      %16 = vector.load %arg6[%c0_14, %c0_15] : memref<16x32xf32, #tpu.memory_space<vmem>>, vector<16x32xf32>
      %17 = arith.addf %15, %16 : vector<16x32xf32>
      %c0_16 = arith.constant 0 : index
      %c0_17 = arith.constant 0 : index
      %18 = vector.load %arg7[%c0_16, %c0_17] : memref<16x32xf32, #tpu.memory_space<vmem>>, vector<16x32xf32>
      tpu.vector_store %arg7[%c0_16, %c0_17], %17 {strides = array<i32>} : memref<16x32xf32, #tpu.memory_space<vmem>>, vector<16x32xf32>,
    } else {
    }
    return
  }
  func.func @transform_0(%arg0: i32, %arg1: i32, %arg2: i32) -> (i32, i32) {
    %c0_i32 = arith.constant 0 : i32
    return %arg0, %arg2 : i32, i32
  }
  func.func @transform_1(%arg0: i32, %arg1: i32, %arg2: i32) -> (i32, i32) {
    %c0_i32 = arith.constant 0 : i32
    return %arg2, %arg1 : i32, i32
  }
  func.func @transform_2(%arg0: i32, %arg1: i32, %arg2: i32) -> (i32, i32) {
    %c0_i32 = arith.constant 0 : i32
    %c0_i32_0 = arith.constant 0 : i32
    return %c0_i32, %arg1 : i32, i32
  }
  func.func @transform_3(%arg0: i32, %arg1: i32, %arg2: i32) -> (i32, i32) {
    %c0_i32 = arith.constant 0 : i32
    return %arg0, %arg1 : i32, i32
  }
  func.func @transform_4(%arg0: i32, %arg1: i32, %arg2: i32) -> (i32, i32) {
    %c0_i32 = arith.constant 0 : i32
    return %arg0, %arg1 : i32, i32
  }
}

module attributes {stable_mosaic.version = 11 : i64} {
  func.func @_ln_matmul_kernel(%arg0: i32, %arg1: i32, %arg2: memref<16x32xf32, #tpu.memory_space<vmem>>, %arg3: memref<1x32xf32, #tpu.memory_space<vmem>>, %arg4: memref<1x32xf32, #tpu.memory_space<vmem>>, %arg5: memref<32x96xbf16, #tpu.memory_space<vmem>>, %arg6: memref<1x96xf32, #tpu.memory_space<vmem>>, %arg7: memref<16x96xbf16, #tpu.memory_space<vmem>>) attributes {dimension_semantics = [#tpu.dimension_semantics<parallel>, #tpu.dimension_semantics<parallel>], iteration_bounds = array<i64: 1, 1>, scalar_prefetch = 0 : i64, scratch_operands = 0 : i64, tpu.core_type = #tpu.core_type<tc>, window_params = [{transform_indices = @transform_0, window_bounds = array<i64: 16, 32>}, {pipeline_mode = #tpu.pipeline_mode<synchronous>, transform_indices = @transform_1, window_bounds = array<i64: 1, 32>}, {pipeline_mode = #tpu.pipeline_mode<synchronous>, transform_indices = @transform_2, window_bounds = array<i64: 1, 32>}, {transform_indices = @transform_3, window_bounds = array<i64: 32, 96>}, {transform_indices = @transform_4, window_bounds = array<i64: 1, 96>}, {transform_indices = @transform_5, window_bounds = array<i64: 16, 96>}]} {
    %c0 = arith.constant 0 : index
    %c0_0 = arith.constant 0 : index
    %0 = vector.load %arg2[%c0, %c0_0] : memref<16x32xf32, #tpu.memory_space<vmem>>, vector<16x32xf32>
    %cst = arith.constant dense<0.000000e+00> : vector<16xf32>
    %1 = vector.multi_reduction <add>, %0, %cst [1] : vector<16x32xf32> to vector<16xf32>
    %2 = vector.shape_cast %1 : vector<16xf32> to vector<16x1xf32>
    %cst_1 = arith.constant 3.200000e+01 : f32
    %3 = vector.broadcast %cst_1 : f32 to vector<16x1xf32>
    %4 = arith.divf %2, %3 : vector<16x1xf32>
    %5 = vector.broadcast %4 : vector<16x1xf32> to vector<16x32xf32>
    %6 = arith.subf %0, %5 : vector<16x32xf32>
    %7 = arith.mulf %6, %6 : vector<16x32xf32>
    %cst_2 = arith.constant dense<0.000000e+00> : vector<16xf32>
    %8 = vector.multi_reduction <add>, %7, %cst_2 [1] : vector<16x32xf32> to vector<16xf32>
    %9 = vector.shape_cast %8 : vector<16xf32> to vector<16x1xf32>
    %cst_3 = arith.constant 3.200000e+01 : f32
    %10 = vector.broadcast %cst_3 : f32 to vector<16x1xf32>
    %11 = arith.divf %9, %10 : vector<16x1xf32>
    %cst_4 = arith.constant 9.99999974E-6 : f32
    %12 = vector.broadcast %cst_4 : f32 to vector<16x1xf32>
    %13 = arith.addf %11, %12 : vector<16x1xf32>
    %14 = math.rsqrt %13 : vector<16x1xf32>
    %15 = vector.broadcast %14 : vector<16x1xf32> to vector<16x32xf32>
    %16 = arith.mulf %6, %15 : vector<16x32xf32>
    %c0_5 = arith.constant 0 : index
    %c0_6 = arith.constant 0 : index
    %17 = vector.load %arg3[%c0_5, %c0_6] : memref<1x32xf32, #tpu.memory_space<vmem>>, vector<1x32xf32>
    %18 = vector.broadcast %17 : vector<1x32xf32> to vector<16x32xf32>
    %19 = arith.mulf %16, %18 : vector<16x32xf32>
    %c0_7 = arith.constant 0 : index
    %c0_8 = arith.constant 0 : index
    %20 = vector.load %arg4[%c0_7, %c0_8] : memref<1x32xf32, #tpu.memory_space<vmem>>, vector<1x32xf32>
    %21 = vector.broadcast %20 : vector<1x32xf32> to vector<16x32xf32>
    %22 = arith.addf %19, %21 : vector<16x32xf32>
    %23 = arith.truncf %22 : vector<16x32xf32> to vector<16x32xbf16>
    %c0_9 = arith.constant 0 : index
    %c0_10 = arith.constant 0 : index
    %24 = vector.load %arg5[%c0_9, %c0_10] : memref<32x96xbf16, #tpu.memory_space<vmem>>, vector<32x96xbf16>
    %cst_11 = arith.constant dense<0.000000e+00> : vector<16x96xf32>
    %25 = tpu.matmul %23, %24, %cst_11 {dimension_numbers = #tpu.dot_dimension_numbers<[1], [0], [0], [1], [0, 0, 1, 1], [], []>} : vector<16x32xbf16>, vector<32x96xbf16>, vector<16x96xf32> -> vector<16x96xf32>
    %c0_12 = arith.constant 0 : index
    %c0_13 = arith.constant 0 : index
    %26 = vector.load %arg6[%c0_12, %c0_13] : memref<1x96xf32, #tpu.memory_space<vmem>>, vector<1x96xf32>
    %27 = vector.broadcast %26 : vector<1x96xf32> to vector<16x96xf32>
    %28 = arith.addf %25, %27 : vector<16x96xf32>
    %29 = arith.truncf %28 : vector<16x96xf32> to vector<16x96xbf16>
    %c0_14 = arith.constant 0 : index
    %c0_15 = arith.constant 0 : index
    %30 = vector.load %arg7[%c0_14, %c0_15] : memref<16x96xbf16, #tpu.memory_space<vmem>>, vector<16x96xbf16>
    tpu.vector_store %arg7[%c0_14, %c0_15], %29 {strides = array<i32>} : memref<16x96xbf16, #tpu.memory_space<vmem>>, vector<16x96xbf16>,
    return
  }
  func.func @transform_0(%arg0: i32, %arg1: i32) -> (i32, i32) {
    %c0_i32 = arith.constant 0 : i32
    %c0_i32_0 = arith.constant 0 : i32
    return %arg0, %c0_i32 : i32, i32
  }
  func.func @transform_1(%arg0: i32, %arg1: i32) -> (i32, i32) {
    %c0_i32 = arith.constant 0 : i32
    %c0_i32_0 = arith.constant 0 : i32
    %c0_i32_1 = arith.constant 0 : i32
    return %c0_i32, %c0_i32_0 : i32, i32
  }
  func.func @transform_2(%arg0: i32, %arg1: i32) -> (i32, i32) {
    %c0_i32 = arith.constant 0 : i32
    %c0_i32_0 = arith.constant 0 : i32
    %c0_i32_1 = arith.constant 0 : i32
    return %c0_i32, %c0_i32_0 : i32, i32
  }
  func.func @transform_3(%arg0: i32, %arg1: i32) -> (i32, i32) {
    %c0_i32 = arith.constant 0 : i32
    %c0_i32_0 = arith.constant 0 : i32
    return %c0_i32, %arg1 : i32, i32
  }
  func.func @transform_4(%arg0: i32, %arg1: i32) -> (i32, i32) {
    %c0_i32 = arith.constant 0 : i32
    %c0_i32_0 = arith.constant 0 : i32
    return %c0_i32, %arg1 : i32, i32
  }
  func.func @transform_5(%arg0: i32, %arg1: i32) -> (i32, i32) {
    %c0_i32 = arith.constant 0 : i32
    return %arg0, %arg1 : i32, i32
  }
}

module attributes {stable_mosaic.version = 11 : i64} {
  func.func @_attention_kernel(%arg0: i32, %arg1: memref<1x8x96xbf16, #tpu.memory_space<vmem>>, %arg2: memref<8x8xf32, #tpu.memory_space<vmem>>, %arg3: memref<8x8xf32, #tpu.memory_space<vmem>>, %arg4: memref<1x8x32xbf16, #tpu.memory_space<vmem>>) attributes {dimension_semantics = [#tpu.dimension_semantics<parallel>], iteration_bounds = array<i64: 2>, scalar_prefetch = 0 : i64, scratch_operands = 0 : i64, tpu.core_type = #tpu.core_type<tc>, window_params = [{transform_indices = @transform_0, window_bounds = array<i64: 1, 8, 96>}, {pipeline_mode = #tpu.pipeline_mode<synchronous>, transform_indices = @transform_1, window_bounds = array<i64: 8, 8>}, {pipeline_mode = #tpu.pipeline_mode<synchronous>, transform_indices = @transform_2, window_bounds = array<i64: 8, 8>}, {transform_indices = @transform_3, window_bounds = array<i64: 1, 8, 32>}]} {
    %c0 = arith.constant 0 : index
    %c0_0 = arith.constant 0 : index
    %c0_1 = arith.constant 0 : index
    %0 = vector.load %arg1[%c0, %c0_0, %c0_1] : memref<1x8x96xbf16, #tpu.memory_space<vmem>>, vector<1x8x96xbf16>
    %1 = vector.shape_cast %0 : vector<1x8x96xbf16> to vector<8x96xbf16>
    %c0_2 = arith.constant 0 : index
    %c0_3 = arith.constant 0 : index
    %2 = vector.load %arg2[%c0_2, %c0_3] : memref<8x8xf32, #tpu.memory_space<vmem>>, vector<8x8xf32>
    %c0_4 = arith.constant 0 : index
    %c0_5 = arith.constant 0 : index
    %3 = vector.load %arg3[%c0_4, %c0_5] : memref<8x8xf32, #tpu.memory_space<vmem>>, vector<8x8xf32>
    %4 = vector.extract_strided_slice %1 {offsets = [0, 0], sizes = [8, 8], strides = [1, 1]} : vector<8x96xbf16> to vector<8x8xbf16>
    %5 = arith.extf %4 : vector<8x8xbf16> to vector<8x8xf32>
    %6 = vector.extract_strided_slice %1 {offsets = [0, 32], sizes = [8, 8], strides = [1, 1]} : vector<8x96xbf16> to vector<8x8xbf16>
    %7 = arith.extf %6 : vector<8x8xbf16> to vector<8x8xf32>
    %8 = vector.extract_strided_slice %1 {offsets = [0, 64], sizes = [8, 8], strides = [1, 1]} : vector<8x96xbf16> to vector<8x8xbf16>
    %9 = vector.extract_strided_slice %5 {offsets = [0, 4], sizes = [8, 4], strides = [1, 1]} : vector<8x8xf32> to vector<8x4xf32>
    %10 = vector.extract_strided_slice %5 {offsets = [0, 0], sizes = [8, 4], strides = [1, 1]} : vector<8x8xf32> to vector<8x4xf32>
    %11 = tpu.concatenate %9, %10 in 1 : vector<8x4xf32>, vector<8x4xf32> -> vector<8x8xf32>
    %12 = arith.mulf %5, %2 : vector<8x8xf32>
    %13 = arith.mulf %11, %3 : vector<8x8xf32>
    %14 = arith.addf %12, %13 : vector<8x8xf32>
    %cst = arith.constant 0.353553385 : f32
    %15 = vector.broadcast %cst : f32 to vector<8x8xf32>
    %16 = arith.mulf %14, %15 : vector<8x8xf32>
    %17 = arith.truncf %16 : vector<8x8xf32> to vector<8x8xbf16>
    %18 = vector.extract_strided_slice %7 {offsets = [0, 4], sizes = [8, 4], strides = [1, 1]} : vector<8x8xf32> to vector<8x4xf32>
    %19 = vector.extract_strided_slice %7 {offsets = [0, 0], sizes = [8, 4], strides = [1, 1]} : vector<8x8xf32> to vector<8x4xf32>
    %20 = tpu.concatenate %18, %19 in 1 : vector<8x4xf32>, vector<8x4xf32> -> vector<8x8xf32>
    %21 = arith.mulf %7, %2 : vector<8x8xf32>
    %22 = arith.mulf %20, %3 : vector<8x8xf32>
    %23 = arith.addf %21, %22 : vector<8x8xf32>
    %24 = arith.truncf %23 : vector<8x8xf32> to vector<8x8xbf16>
    %cst_6 = arith.constant dense<0.000000e+00> : vector<8x8xf32>
    %25 = tpu.matmul %17, %24, %cst_6 {dimension_numbers = #tpu.dot_dimension_numbers<[1], [1], [0], [0], [0, 0, 1, 0], [], []>} : vector<8x8xbf16>, vector<8x8xbf16>, vector<8x8xf32> -> vector<8x8xf32>
    %cst_7 = arith.constant dense<0xFF800000> : vector<8xf32>
    %26 = vector.multi_reduction <maximumf>, %25, %cst_7 [1] : vector<8x8xf32> to vector<8xf32>
    %27 = vector.shape_cast %26 : vector<8xf32> to vector<8x1xf32>
    %28 = vector.broadcast %27 : vector<8x1xf32> to vector<8x8xf32>
    %29 = arith.subf %25, %28 : vector<8x8xf32>
    %30 = math.exp %29 : vector<8x8xf32>
    %cst_8 = arith.constant dense<0.000000e+00> : vector<8xf32>
    %31 = vector.multi_reduction <add>, %30, %cst_8 [1] : vector<8x8xf32> to vector<8xf32>
    %32 = vector.shape_cast %31 : vector<8xf32> to vector<8x1xf32>
    %33 = arith.truncf %30 : vector<8x8xf32> to vector<8x8xbf16>
    %cst_9 = arith.constant dense<0.000000e+00> : vector<8x8xf32>
    %34 = tpu.matmul %33, %8, %cst_9 {dimension_numbers = #tpu.dot_dimension_numbers<[1], [0], [0], [1], [0, 0, 1, 1], [], []>} : vector<8x8xbf16>, vector<8x8xbf16>, vector<8x8xf32> -> vector<8x8xf32>
    %35 = tpu.reciprocal %32 {approx = true} : vector<8x1xf32> -> vector<8x1xf32>
    %36 = vector.broadcast %35 : vector<8x1xf32> to vector<8x8xf32>
    %37 = arith.mulf %34, %36 : vector<8x8xf32>
    %38 = vector.extract_strided_slice %1 {offsets = [0, 8], sizes = [8, 8], strides = [1, 1]} : vector<8x96xbf16> to vector<8x8xbf16>
    %39 = arith.extf %38 : vector<8x8xbf16> to vector<8x8xf32>
    %40 = vector.extract_strided_slice %1 {offsets = [0, 40], sizes = [8, 8], strides = [1, 1]} : vector<8x96xbf16> to vector<8x8xbf16>
    %41 = arith.extf %40 : vector<8x8xbf16> to vector<8x8xf32>
    %42 = vector.extract_strided_slice %1 {offsets = [0, 72], sizes = [8, 8], strides = [1, 1]} : vector<8x96xbf16> to vector<8x8xbf16>
    %43 = vector.extract_strided_slice %39 {offsets = [0, 4], sizes = [8, 4], strides = [1, 1]} : vector<8x8xf32> to vector<8x4xf32>
    %44 = vector.extract_strided_slice %39 {offsets = [0, 0], sizes = [8, 4], strides = [1, 1]} : vector<8x8xf32> to vector<8x4xf32>
    %45 = tpu.concatenate %43, %44 in 1 : vector<8x4xf32>, vector<8x4xf32> -> vector<8x8xf32>
    %46 = arith.mulf %39, %2 : vector<8x8xf32>
    %47 = arith.mulf %45, %3 : vector<8x8xf32>
    %48 = arith.addf %46, %47 : vector<8x8xf32>
    %cst_10 = arith.constant 0.353553385 : f32
    %49 = vector.broadcast %cst_10 : f32 to vector<8x8xf32>
    %50 = arith.mulf %48, %49 : vector<8x8xf32>
    %51 = arith.truncf %50 : vector<8x8xf32> to vector<8x8xbf16>
    %52 = vector.extract_strided_slice %41 {offsets = [0, 4], sizes = [8, 4], strides = [1, 1]} : vector<8x8xf32> to vector<8x4xf32>
    %53 = vector.extract_strided_slice %41 {offsets = [0, 0], sizes = [8, 4], strides = [1, 1]} : vector<8x8xf32> to vector<8x4xf32>
    %54 = tpu.concatenate %52, %53 in 1 : vector<8x4xf32>, vector<8x4xf32> -> vector<8x8xf32>
    %55 = arith.mulf %41, %2 : vector<8x8xf32>
    %56 = arith.mulf %54, %3 : vector<8x8xf32>
    %57 = arith.addf %55, %56 : vector<8x8xf32>
    %58 = arith.truncf %57 : vector<8x8xf32> to vector<8x8xbf16>
    %cst_11 = arith.constant dense<0.000000e+00> : vector<8x8xf32>
    %59 = tpu.matmul %51, %58, %cst_11 {dimension_numbers = #tpu.dot_dimension_numbers<[1], [1], [0], [0], [0, 0, 1, 0], [], []>} : vector<8x8xbf16>, vector<8x8xbf16>, vector<8x8xf32> -> vector<8x8xf32>
    %cst_12 = arith.constant dense<0xFF800000> : vector<8xf32>
    %60 = vector.multi_reduction <maximumf>, %59, %cst_12 [1] : vector<8x8xf32> to vector<8xf32>
    %61 = vector.shape_cast %60 : vector<8xf32> to vector<8x1xf32>
    %62 = vector.broadcast %61 : vector<8x1xf32> to vector<8x8xf32>
    %63 = arith.subf %59, %62 : vector<8x8xf32>
    %64 = math.exp %63 : vector<8x8xf32>
    %cst_13 = arith.constant dense<0.000000e+00> : vector<8xf32>
    %65 = vector.multi_reduction <add>, %64, %cst_13 [1] : vector<8x8xf32> to vector<8xf32>
    %66 = vector.shape_cast %65 : vector<8xf32> to vector<8x1xf32>
    %67 = arith.truncf %64 : vector<8x8xf32> to vector<8x8xbf16>
    %cst_14 = arith.constant dense<0.000000e+00> : vector<8x8xf32>
    %68 = tpu.matmul %67, %42, %cst_14 {dimension_numbers = #tpu.dot_dimension_numbers<[1], [0], [0], [1], [0, 0, 1, 1], [], []>} : vector<8x8xbf16>, vector<8x8xbf16>, vector<8x8xf32> -> vector<8x8xf32>
    %69 = tpu.reciprocal %66 {approx = true} : vector<8x1xf32> -> vector<8x1xf32>
    %70 = vector.broadcast %69 : vector<8x1xf32> to vector<8x8xf32>
    %71 = arith.mulf %68, %70 : vector<8x8xf32>
    %72 = vector.extract_strided_slice %1 {offsets = [0, 16], sizes = [8, 8], strides = [1, 1]} : vector<8x96xbf16> to vector<8x8xbf16>
    %73 = arith.extf %72 : vector<8x8xbf16> to vector<8x8xf32>
    %74 = vector.extract_strided_slice %1 {offsets = [0, 48], sizes = [8, 8], strides = [1, 1]} : vector<8x96xbf16> to vector<8x8xbf16>
    %75 = arith.extf %74 : vector<8x8xbf16> to vector<8x8xf32>
    %76 = vector.extract_strided_slice %1 {offsets = [0, 80], sizes = [8, 8], strides = [1, 1]} : vector<8x96xbf16> to vector<8x8xbf16>
    %77 = vector.extract_strided_slice %73 {offsets = [0, 4], sizes = [8, 4], strides = [1, 1]} : vector<8x8xf32> to vector<8x4xf32>
    %78 = vector.extract_strided_slice %73 {offsets = [0, 0], sizes = [8, 4], strides = [1, 1]} : vector<8x8xf32> to vector<8x4xf32>
    %79 = tpu.concatenate %77, %78 in 1 : vector<8x4xf32>, vector<8x4xf32> -> vector<8x8xf32>
    %80 = arith.mulf %73, %2 : vector<8x8xf32>
    %81 = arith.mulf %79, %3 : vector<8x8xf32>
    %82 = arith.addf %80, %81 : vector<8x8xf32>
    %cst_15 = arith.constant 0.353553385 : f32
    %83 = vector.broadcast %cst_15 : f32 to vector<8x8xf32>
    %84 = arith.mulf %82, %83 : vector<8x8xf32>
    %85 = arith.truncf %84 : vector<8x8xf32> to vector<8x8xbf16>
    %86 = vector.extract_strided_slice %75 {offsets = [0, 4], sizes = [8, 4], strides = [1, 1]} : vector<8x8xf32> to vector<8x4xf32>
    %87 = vector.extract_strided_slice %75 {offsets = [0, 0], sizes = [8, 4], strides = [1, 1]} : vector<8x8xf32> to vector<8x4xf32>
    %88 = tpu.concatenate %86, %87 in 1 : vector<8x4xf32>, vector<8x4xf32> -> vector<8x8xf32>
    %89 = arith.mulf %75, %2 : vector<8x8xf32>
    %90 = arith.mulf %88, %3 : vector<8x8xf32>
    %91 = arith.addf %89, %90 : vector<8x8xf32>
    %92 = arith.truncf %91 : vector<8x8xf32> to vector<8x8xbf16>
    %cst_16 = arith.constant dense<0.000000e+00> : vector<8x8xf32>
    %93 = tpu.matmul %85, %92, %cst_16 {dimension_numbers = #tpu.dot_dimension_numbers<[1], [1], [0], [0], [0, 0, 1, 0], [], []>} : vector<8x8xbf16>, vector<8x8xbf16>, vector<8x8xf32> -> vector<8x8xf32>
    %cst_17 = arith.constant dense<0xFF800000> : vector<8xf32>
    %94 = vector.multi_reduction <maximumf>, %93, %cst_17 [1] : vector<8x8xf32> to vector<8xf32>
    %95 = vector.shape_cast %94 : vector<8xf32> to vector<8x1xf32>
    %96 = vector.broadcast %95 : vector<8x1xf32> to vector<8x8xf32>
    %97 = arith.subf %93, %96 : vector<8x8xf32>
    %98 = math.exp %97 : vector<8x8xf32>
    %cst_18 = arith.constant dense<0.000000e+00> : vector<8xf32>
    %99 = vector.multi_reduction <add>, %98, %cst_18 [1] : vector<8x8xf32> to vector<8xf32>
    %100 = vector.shape_cast %99 : vector<8xf32> to vector<8x1xf32>
    %101 = arith.truncf %98 : vector<8x8xf32> to vector<8x8xbf16>
    %cst_19 = arith.constant dense<0.000000e+00> : vector<8x8xf32>
    %102 = tpu.matmul %101, %76, %cst_19 {dimension_numbers = #tpu.dot_dimension_numbers<[1], [0], [0], [1], [0, 0, 1, 1], [], []>} : vector<8x8xbf16>, vector<8x8xbf16>, vector<8x8xf32> -> vector<8x8xf32>
    %103 = tpu.reciprocal %100 {approx = true} : vector<8x1xf32> -> vector<8x1xf32>
    %104 = vector.broadcast %103 : vector<8x1xf32> to vector<8x8xf32>
    %105 = arith.mulf %102, %104 : vector<8x8xf32>
    %106 = vector.extract_strided_slice %1 {offsets = [0, 24], sizes = [8, 8], strides = [1, 1]} : vector<8x96xbf16> to vector<8x8xbf16>
    %107 = arith.extf %106 : vector<8x8xbf16> to vector<8x8xf32>
    %108 = vector.extract_strided_slice %1 {offsets = [0, 56], sizes = [8, 8], strides = [1, 1]} : vector<8x96xbf16> to vector<8x8xbf16>
    %109 = arith.extf %108 : vector<8x8xbf16> to vector<8x8xf32>
    %110 = vector.extract_strided_slice %1 {offsets = [0, 88], sizes = [8, 8], strides = [1, 1]} : vector<8x96xbf16> to vector<8x8xbf16>
    %111 = vector.extract_strided_slice %107 {offsets = [0, 4], sizes = [8, 4], strides = [1, 1]} : vector<8x8xf32> to vector<8x4xf32>
    %112 = vector.extract_strided_slice %107 {offsets = [0, 0], sizes = [8, 4], strides = [1, 1]} : vector<8x8xf32> to vector<8x4xf32>
    %113 = tpu.concatenate %111, %112 in 1 : vector<8x4xf32>, vector<8x4xf32> -> vector<8x8xf32>
    %114 = arith.mulf %107, %2 : vector<8x8xf32>
    %115 = arith.mulf %113, %3 : vector<8x8xf32>
    %116 = arith.addf %114, %115 : vector<8x8xf32>
    %cst_20 = arith.constant 0.353553385 : f32
    %117 = vector.broadcast %cst_20 : f32 to vector<8x8xf32>
    %118 = arith.mulf %116, %117 : vector<8x8xf32>
    %119 = arith.truncf %118 : vector<8x8xf32> to vector<8x8xbf16>
    %120 = vector.extract_strided_slice %109 {offsets = [0, 4], sizes = [8, 4], strides = [1, 1]} : vector<8x8xf32> to vector<8x4xf32>
    %121 = vector.extract_strided_slice %109 {offsets = [0, 0], sizes = [8, 4], strides = [1, 1]} : vector<8x8xf32> to vector<8x4xf32>
    %122 = tpu.concatenate %120, %121 in 1 : vector<8x4xf32>, vector<8x4xf32> -> vector<8x8xf32>
    %123 = arith.mulf %109, %2 : vector<8x8xf32>
    %124 = arith.mulf %122, %3 : vector<8x8xf32>
    %125 = arith.addf %123, %124 : vector<8x8xf32>
    %126 = arith.truncf %125 : vector<8x8xf32> to vector<8x8xbf16>
    %cst_21 = arith.constant dense<0.000000e+00> : vector<8x8xf32>
    %127 = tpu.matmul %119, %126, %cst_21 {dimension_numbers = #tpu.dot_dimension_numbers<[1], [1], [0], [0], [0, 0, 1, 0], [], []>} : vector<8x8xbf16>, vector<8x8xbf16>, vector<8x8xf32> -> vector<8x8xf32>
    %cst_22 = arith.constant dense<0xFF800000> : vector<8xf32>
    %128 = vector.multi_reduction <maximumf>, %127, %cst_22 [1] : vector<8x8xf32> to vector<8xf32>
    %129 = vector.shape_cast %128 : vector<8xf32> to vector<8x1xf32>
    %130 = vector.broadcast %129 : vector<8x1xf32> to vector<8x8xf32>
    %131 = arith.subf %127, %130 : vector<8x8xf32>
    %132 = math.exp %131 : vector<8x8xf32>
    %cst_23 = arith.constant dense<0.000000e+00> : vector<8xf32>
    %133 = vector.multi_reduction <add>, %132, %cst_23 [1] : vector<8x8xf32> to vector<8xf32>
    %134 = vector.shape_cast %133 : vector<8xf32> to vector<8x1xf32>
    %135 = arith.truncf %132 : vector<8x8xf32> to vector<8x8xbf16>
    %cst_24 = arith.constant dense<0.000000e+00> : vector<8x8xf32>
    %136 = tpu.matmul %135, %110, %cst_24 {dimension_numbers = #tpu.dot_dimension_numbers<[1], [0], [0], [1], [0, 0, 1, 1], [], []>} : vector<8x8xbf16>, vector<8x8xbf16>, vector<8x8xf32> -> vector<8x8xf32>
    %137 = tpu.reciprocal %134 {approx = true} : vector<8x1xf32> -> vector<8x1xf32>
    %138 = vector.broadcast %137 : vector<8x1xf32> to vector<8x8xf32>
    %139 = arith.mulf %136, %138 : vector<8x8xf32>
    %140 = tpu.concatenate %37, %71, %105, %139 in 1 : vector<8x8xf32>, vector<8x8xf32>, vector<8x8xf32>, vector<8x8xf32> -> vector<8x32xf32>
    %141 = arith.truncf %140 : vector<8x32xf32> to vector<8x32xbf16>
    %c0_25 = arith.constant 0 : index
    %c0_26 = arith.constant 0 : index
    %c0_27 = arith.constant 0 : index
    %142 = vector.load %arg4[%c0_25, %c0_26, %c0_27] : memref<1x8x32xbf16, #tpu.memory_space<vmem>>, vector<1x8x32xbf16>
    %143 = vector.shape_cast %142 : vector<1x8x32xbf16> to vector<8x32xbf16>
    %144 = vector.shape_cast %141 : vector<8x32xbf16> to vector<1x8x32xbf16>
    tpu.vector_store %arg4[%c0_25, %c0_26, %c0_27], %144 {strides = array<i32>} : memref<1x8x32xbf16, #tpu.memory_space<vmem>>, vector<1x8x32xbf16>,
    return
  }
  func.func @transform_0(%arg0: i32) -> (i32, i32, i32) {
    %c0_i32 = arith.constant 0 : i32
    %c0_i32_0 = arith.constant 0 : i32
    %c0_i32_1 = arith.constant 0 : i32
    return %arg0, %c0_i32, %c0_i32_0 : i32, i32, i32
  }
  func.func @transform_1(%arg0: i32) -> (i32, i32) {
    %c0_i32 = arith.constant 0 : i32
    %c0_i32_0 = arith.constant 0 : i32
    %c0_i32_1 = arith.constant 0 : i32
    return %c0_i32, %c0_i32_0 : i32, i32
  }
  func.func @transform_2(%arg0: i32) -> (i32, i32) {
    %c0_i32 = arith.constant 0 : i32
    %c0_i32_0 = arith.constant 0 : i32
    %c0_i32_1 = arith.constant 0 : i32
    return %c0_i32, %c0_i32_0 : i32, i32
  }
  func.func @transform_3(%arg0: i32) -> (i32, i32, i32) {
    %c0_i32 = arith.constant 0 : i32
    %c0_i32_0 = arith.constant 0 : i32
    %c0_i32_1 = arith.constant 0 : i32
    return %arg0, %c0_i32, %c0_i32_0 : i32, i32, i32
  }
}

module attributes {stable_mosaic.version = 11 : i64} {
  func.func @_layernorm_kernel(%arg0: i32, %arg1: memref<16x32xf32, #tpu.memory_space<vmem>>, %arg2: memref<1x32xf32, #tpu.memory_space<vmem>>, %arg3: memref<1x32xf32, #tpu.memory_space<vmem>>, %arg4: memref<16x32xf32, #tpu.memory_space<vmem>>) attributes {dimension_semantics = [#tpu.dimension_semantics<parallel>], iteration_bounds = array<i64: 1>, scalar_prefetch = 0 : i64, scratch_operands = 0 : i64, tpu.core_type = #tpu.core_type<tc>, window_params = [{transform_indices = @transform_0, window_bounds = array<i64: 16, 32>}, {pipeline_mode = #tpu.pipeline_mode<synchronous>, transform_indices = @transform_1, window_bounds = array<i64: 1, 32>}, {pipeline_mode = #tpu.pipeline_mode<synchronous>, transform_indices = @transform_2, window_bounds = array<i64: 1, 32>}, {transform_indices = @transform_3, window_bounds = array<i64: 16, 32>}]} {
    %c0 = arith.constant 0 : index
    %c0_0 = arith.constant 0 : index
    %0 = vector.load %arg1[%c0, %c0_0] : memref<16x32xf32, #tpu.memory_space<vmem>>, vector<16x32xf32>
    %cst = arith.constant dense<0.000000e+00> : vector<16xf32>
    %1 = vector.multi_reduction <add>, %0, %cst [1] : vector<16x32xf32> to vector<16xf32>
    %2 = vector.shape_cast %1 : vector<16xf32> to vector<16x1xf32>
    %cst_1 = arith.constant 3.200000e+01 : f32
    %3 = vector.broadcast %cst_1 : f32 to vector<16x1xf32>
    %4 = arith.divf %2, %3 : vector<16x1xf32>
    %5 = vector.broadcast %4 : vector<16x1xf32> to vector<16x32xf32>
    %6 = arith.subf %0, %5 : vector<16x32xf32>
    %7 = arith.mulf %6, %6 : vector<16x32xf32>
    %cst_2 = arith.constant dense<0.000000e+00> : vector<16xf32>
    %8 = vector.multi_reduction <add>, %7, %cst_2 [1] : vector<16x32xf32> to vector<16xf32>
    %9 = vector.shape_cast %8 : vector<16xf32> to vector<16x1xf32>
    %cst_3 = arith.constant 3.200000e+01 : f32
    %10 = vector.broadcast %cst_3 : f32 to vector<16x1xf32>
    %11 = arith.divf %9, %10 : vector<16x1xf32>
    %cst_4 = arith.constant 9.99999974E-6 : f32
    %12 = vector.broadcast %cst_4 : f32 to vector<16x1xf32>
    %13 = arith.addf %11, %12 : vector<16x1xf32>
    %14 = math.rsqrt %13 : vector<16x1xf32>
    %15 = vector.broadcast %14 : vector<16x1xf32> to vector<16x32xf32>
    %16 = arith.mulf %6, %15 : vector<16x32xf32>
    %c0_5 = arith.constant 0 : index
    %c0_6 = arith.constant 0 : index
    %17 = vector.load %arg2[%c0_5, %c0_6] : memref<1x32xf32, #tpu.memory_space<vmem>>, vector<1x32xf32>
    %18 = vector.broadcast %17 : vector<1x32xf32> to vector<16x32xf32>
    %19 = arith.mulf %16, %18 : vector<16x32xf32>
    %c0_7 = arith.constant 0 : index
    %c0_8 = arith.constant 0 : index
    %20 = vector.load %arg3[%c0_7, %c0_8] : memref<1x32xf32, #tpu.memory_space<vmem>>, vector<1x32xf32>
    %21 = vector.broadcast %20 : vector<1x32xf32> to vector<16x32xf32>
    %22 = arith.addf %19, %21 : vector<16x32xf32>
    %c0_9 = arith.constant 0 : index
    %c0_10 = arith.constant 0 : index
    %23 = vector.load %arg4[%c0_9, %c0_10] : memref<16x32xf32, #tpu.memory_space<vmem>>, vector<16x32xf32>
    tpu.vector_store %arg4[%c0_9, %c0_10], %22 {strides = array<i32>} : memref<16x32xf32, #tpu.memory_space<vmem>>, vector<16x32xf32>,
    return
  }
  func.func @transform_0(%arg0: i32) -> (i32, i32) {
    %c0_i32 = arith.constant 0 : i32
    %c0_i32_0 = arith.constant 0 : i32
    return %arg0, %c0_i32 : i32, i32
  }
  func.func @transform_1(%arg0: i32) -> (i32, i32) {
    %c0_i32 = arith.constant 0 : i32
    %c0_i32_0 = arith.constant 0 : i32
    %c0_i32_1 = arith.constant 0 : i32
    return %c0_i32, %c0_i32_0 : i32, i32
  }
  func.func @transform_2(%arg0: i32) -> (i32, i32) {
    %c0_i32 = arith.constant 0 : i32
    %c0_i32_0 = arith.constant 0 : i32
    %c0_i32_1 = arith.constant 0 : i32
    return %c0_i32, %c0_i32_0 : i32, i32
  }
  func.func @transform_3(%arg0: i32) -> (i32, i32) {
    %c0_i32 = arith.constant 0 : i32
    %c0_i32_0 = arith.constant 0 : i32
    return %arg0, %c0_i32 : i32, i32
  }
}

module attributes {stable_mosaic.version = 11 : i64} {
  func.func @_matmul_bias_res_kernel(%arg0: i32, %arg1: i32, %arg2: i32, %arg3: memref<16x128xbf16, #tpu.memory_space<vmem>>, %arg4: memref<128x32xbf16, #tpu.memory_space<vmem>>, %arg5: memref<1x32xf32, #tpu.memory_space<vmem>>, %arg6: memref<16x32xf32, #tpu.memory_space<vmem>>, %arg7: memref<16x32xf32, #tpu.memory_space<vmem>>, %arg8: memref<16x32xf32, #tpu.memory_space<vmem>>) attributes {dimension_semantics = [#tpu.dimension_semantics<parallel>, #tpu.dimension_semantics<parallel>, #tpu.dimension_semantics<arbitrary>], iteration_bounds = array<i64: 1, 1, 1>, scalar_prefetch = 0 : i64, scratch_operands = 1 : i64, tpu.core_type = #tpu.core_type<tc>, window_params = [{transform_indices = @transform_0, window_bounds = array<i64: 16, 128>}, {transform_indices = @transform_1, window_bounds = array<i64: 128, 32>}, {transform_indices = @transform_2, window_bounds = array<i64: 1, 32>}, {transform_indices = @transform_3, window_bounds = array<i64: 16, 32>}, {transform_indices = @transform_4, window_bounds = array<i64: 16, 32>}]} {
    %c0_i32 = arith.constant 0 : i32
    %0 = arith.cmpi eq, %arg2, %c0_i32 : i32
    %1 = arith.extui %0 : i1 to i32
    %c0_i32_0 = arith.constant 0 : i32
    %2 = arith.cmpi ne, %1, %c0_i32_0 : i32
    scf.if %2 {
      %cst_10 = arith.constant 0.000000e+00 : f32
      %12 = vector.broadcast %cst_10 : f32 to vector<16x32xf32>
      %c0_11 = arith.constant 0 : index
      %c0_12 = arith.constant 0 : index
      %13 = vector.load %arg8[%c0_11, %c0_12] : memref<16x32xf32, #tpu.memory_space<vmem>>, vector<16x32xf32>
      tpu.vector_store %arg8[%c0_11, %c0_12], %12 {strides = array<i32>} : memref<16x32xf32, #tpu.memory_space<vmem>>, vector<16x32xf32>,
    } else {
    }
    %c0 = arith.constant 0 : index
    %c0_1 = arith.constant 0 : index
    %3 = vector.load %arg8[%c0, %c0_1] : memref<16x32xf32, #tpu.memory_space<vmem>>, vector<16x32xf32>
    %c0_2 = arith.constant 0 : index
    %c0_3 = arith.constant 0 : index
    %4 = vector.load %arg3[%c0_2, %c0_3] : memref<16x128xbf16, #tpu.memory_space<vmem>>, vector<16x128xbf16>
    %c0_4 = arith.constant 0 : index
    %c0_5 = arith.constant 0 : index
    %5 = vector.load %arg4[%c0_4, %c0_5] : memref<128x32xbf16, #tpu.memory_space<vmem>>, vector<128x32xbf16>
    %cst = arith.constant dense<0.000000e+00> : vector<16x32xf32>
    %6 = tpu.matmul %4, %5, %cst {dimension_numbers = #tpu.dot_dimension_numbers<[1], [0], [0], [1], [0, 0, 1, 1], [], []>} : vector<16x128xbf16>, vector<128x32xbf16>, vector<16x32xf32> -> vector<16x32xf32>
    %7 = arith.addf %3, %6 : vector<16x32xf32>
    %c0_6 = arith.constant 0 : index
    %c0_7 = arith.constant 0 : index
    %8 = vector.load %arg8[%c0_6, %c0_7] : memref<16x32xf32, #tpu.memory_space<vmem>>, vector<16x32xf32>
    tpu.vector_store %arg8[%c0_6, %c0_7], %7 {strides = array<i32>} : memref<16x32xf32, #tpu.memory_space<vmem>>, vector<16x32xf32>,
    %c0_i32_8 = arith.constant 0 : i32
    %9 = arith.cmpi eq, %arg2, %c0_i32_8 : i32
    %10 = arith.extui %9 : i1 to i32
    %c0_i32_9 = arith.constant 0 : i32
    %11 = arith.cmpi ne, %10, %c0_i32_9 : i32
    scf.if %11 {
      %c0_10 = arith.constant 0 : index
      %c0_11 = arith.constant 0 : index
      %12 = vector.load %arg8[%c0_10, %c0_11] : memref<16x32xf32, #tpu.memory_space<vmem>>, vector<16x32xf32>
      %c0_12 = arith.constant 0 : index
      %c0_13 = arith.constant 0 : index
      %13 = vector.load %arg5[%c0_12, %c0_13] : memref<1x32xf32, #tpu.memory_space<vmem>>, vector<1x32xf32>
      %14 = vector.broadcast %13 : vector<1x32xf32> to vector<16x32xf32>
      %15 = arith.addf %12, %14 : vector<16x32xf32>
      %c0_14 = arith.constant 0 : index
      %c0_15 = arith.constant 0 : index
      %16 = vector.load %arg6[%c0_14, %c0_15] : memref<16x32xf32, #tpu.memory_space<vmem>>, vector<16x32xf32>
      %17 = arith.addf %15, %16 : vector<16x32xf32>
      %c0_16 = arith.constant 0 : index
      %c0_17 = arith.constant 0 : index
      %18 = vector.load %arg7[%c0_16, %c0_17] : memref<16x32xf32, #tpu.memory_space<vmem>>, vector<16x32xf32>
      tpu.vector_store %arg7[%c0_16, %c0_17], %17 {strides = array<i32>} : memref<16x32xf32, #tpu.memory_space<vmem>>, vector<16x32xf32>,
    } else {
    }
    return
  }
  func.func @transform_0(%arg0: i32, %arg1: i32, %arg2: i32) -> (i32, i32) {
    %c0_i32 = arith.constant 0 : i32
    return %arg0, %arg2 : i32, i32
  }
  func.func @transform_1(%arg0: i32, %arg1: i32, %arg2: i32) -> (i32, i32) {
    %c0_i32 = arith.constant 0 : i32
    return %arg2, %arg1 : i32, i32
  }
  func.func @transform_2(%arg0: i32, %arg1: i32, %arg2: i32) -> (i32, i32) {
    %c0_i32 = arith.constant 0 : i32
    %c0_i32_0 = arith.constant 0 : i32
    return %c0_i32, %arg1 : i32, i32
  }
  func.func @transform_3(%arg0: i32, %arg1: i32, %arg2: i32) -> (i32, i32) {
    %c0_i32 = arith.constant 0 : i32
    return %arg0, %arg1 : i32, i32
  }
  func.func @transform_4(%arg0: i32, %arg1: i32, %arg2: i32) -> (i32, i32) {
    %c0_i32 = arith.constant 0 : i32
    return %arg0, %arg1 : i32, i32
  }
}

</mosaic_0001>

<bundles_post_ra>
// kernel: esm2_forward.13
= control target key start
LH: loop header
LB: loop body
LE: loop exit
PB: predicated region body
PF: predicated region fallthrough
CT: control target
= control target key end

     0   :  { %vm22_vm0 = vcmask 261120   ;;  %v144_v0 = vmov 0.0   ;;  %vm145_vm1 = vmmov 0   ;;  %s202_s1 = inlined_call_operand.vmem [shape: bf16[32,32], index: 1, kind: input, shape index: {}]   ;;  %s203_s0 = inlined_call_operand.vmem [shape: bf16[16,32], index: 0, kind: input, shape index: {}]   ;;  %s204_s2 = inlined_call_operand.vmem [shape: f32[1,32], index: 2, kind: input, shape index: {}]   ;;  %s205_s3 = inlined_call_operand.vmem [shape: f32[16,32], index: 3, kind: input, shape index: {}]   ;;  %s206_s4 = inlined_call_operand.vmem [shape: f32[16,32], index: 4, kind: output, shape index: {}]  }
   0x1   :  { %131 = vmatprep.subr.bf16.mxu0 %v144_v0  ;;  %v141_v1 = vld [vmem:[%s202_s1 + $0x8] sm:$0xff]   ;;  %135 = vmatprep.mubr.msk.bf16.mxu0 %vm145_vm1, %v144_v0  ;;  %23 = vst.msk [vmem:[#allocation2] sm:$0xff] %vm22_vm0, %v144_v0  ;;  %24 = vst.msk [vmem:[#allocation2 + $0x8] sm:$0xff] %vm22_vm0, %v144_v0  ;;  %v142_v2 = vld [vmem:[%s202_s1] sm:$0xff]  }
   0x2   :  { %132 = vmatpush3.bf16.msra.mxu0 %v141_v1  ;;  %v143_v3 = vld [vmem:[%s203_s0] sm:$0xff]   ;;  %v114_v18 = vld [vmem:[%s205_s3 + $0x8] sm:$0xff] }
   0x3   :  { %133 = vmatprep.subr.bf16.mxu0 %v144_v0  ;;  %v127_v12 = vld [vmem:[%s204_s2] ss:$0 sm:$0xff] }
   0x4   :  { %v113_v14 = vld [vmem:[%s205_s3] sm:$0xff] }
   0x6   :  { %134 = vmatpush3.bf16.msra.mxu0 %v142_v2 }
   0x8   :  { %v25_v4 = vld [vmem:[#allocation2] sm:$0xff]  ;;  %v26_v8 = vld [vmem:[#allocation2 + $0x8] sm:$0xff] }
   0x9   :  { %136 = vmatmul.mubr.msk.bf16.vlgmr.msra.gmra.mxu0 %vm22_vm0, %v143_v3 }
  0xc9   :  { %v88_v5 = vpop.f32.mrf.mxu0 }
  0xca   :  { %v95_v6 = vadd.f32 %v88_v5, %v25_v4 }
  0xcb   :  { %v137_v7 = vpop.f32.mrf.mxu0 }
  0xcc   :  { %97 = vst.msk [vmem:[#allocation2] sm:$0xff] %vm22_vm0, %v95_v6 }
  0xcd   :  { %v91_v9 = vpop.f32.mrf.mxu0 }
  0xce   :  { %v96_v10 = vadd.f32 %v91_v9, %v26_v8 }
  0xcf   :  { %v138_v11 = vpop.f32.mrf.mxu0 }
  0xd0   :  { %98 = vst.msk [vmem:[#allocation2 + $0x8] sm:$0xff] %vm22_vm0, %v96_v10 }
  0xd3   :  { %v102_v13 = vld [vmem:[#allocation2] sm:$0xff] }
  0xd4   :  { %v111_v15 = vadd.f32 %v127_v12, %v102_v13 }
  0xd6   :  { %v115_v16 = vadd.f32 %v113_v14, %v111_v15 }
  0xd7   :  { %v103_v17 = vld [vmem:[#allocation2 + $0x8] sm:$0xff] }
  0xd8   :  { %117 = vst.msk [vmem:[%s206_s4] sm:$0xff] %vm22_vm0, %v115_v16  ;;  %v112_v19 = vadd.f32 %v127_v12, %v103_v17 }
  0xda   :  { %v116_v20 = vadd.f32 %v114_v18, %v112_v19 }
  0xdc   :  { %118 = vst.msk [vmem:[%s206_s4 + $0x8] sm:$0xff] %vm22_vm0, %v116_v20 }

// kernel: esm2_forward.14
= control target key start
LH: loop header
LB: loop body
LE: loop exit
PB: predicated region body
PF: predicated region fallthrough
CT: control target
= control target key end

     0   :  { %vm23_vm0 = vcmask 261120   ;;  %v207_v14 = vmov 0.0   ;;  %vm208_vm1 = vmmov 0   ;;  %s268_s0 = inlined_call_operand.vmem [shape: f32[16,32], index: 0, kind: input, shape index: {}]   ;;  %s269_s3 = inlined_call_operand.vmem [shape: bf16[32,128], index: 3, kind: input, shape index: {}]   ;;  %s270_s1 = inlined_call_operand.vmem [shape: f32[1,32], index: 1, kind: input, shape index: {}]   ;;  %s271_s2 = inlined_call_operand.vmem [shape: f32[1,32], index: 2, kind: input, shape index: {}]   ;;  %s272_s4 = inlined_call_operand.vmem [shape: f32[1,128], index: 4, kind: input, shape index: {}]   ;;  %s273_s5 = inlined_call_operand.vmem [shape: bf16[16,128], index: 5, kind: output, shape index: {}]  }
   0x1   :  { %v21_v0 = vld [vmem:[%s268_s0] sm:$0xff]  ;;  %v22_v1 = vld [vmem:[%s268_s0 + $0x8] sm:$0xff]  ;;  %187 = vmatprep.subr.bf16.mxu0 %v207_v14  ;;  %191 = vmatprep.mubr.msk.bf16.mxu0 %vm208_vm1, %v207_v14 }
   0x2   :  { %v24_v2 = vsel %vm23_vm0, %v21_v0, 0.0  ;;  %v27_v3 = vsel %vm23_vm0, %v22_v1, 0.0  ;;  %v197_v15 = vld [vmem:[%s269_s3 + $0x8] sm:$0xff]   ;;  %v198_v16 = vld [vmem:[%s269_s3] sm:$0xff]  }
   0x3   :  { %25 = vadd.xlane.f32.xlu0 %v24_v2  ;;  %188 = vmatpush3.bf16.msra.mxu0 %v197_v15  ;;  %v169_v25 = vld [vmem:[%s270_s1] ss:$0 sm:$0xff] }
   0x4   :  { %189 = vmatprep.subr.bf16.mxu0 %v207_v14  ;;  %v170_v29 = vld [vmem:[%s271_s2] ss:$0 sm:$0xff] }
   0x5   :  { %v171_v34 = vld [vmem:[%s272_s4] ss:$0 sm:$0xff] }
   0x7   :  { %28 = vadd.xlane.f32.xlu0 %v27_v3  ;;  %190 = vmatpush3.bf16.msra.mxu0 %v198_v16 }
  0x8c   :  { %v26_v4 = vpop.xlane.xlu0 %25 }
  0x8d   :  { %v31_v5 = vmul.f32 0.03125, %v26_v4 }
  0x8f   :  { %v33_v6 = vsub.f32 %v21_v0, %v31_v5 }
  0x90   :  { %v29_v7 = vpop.xlane.xlu0 %28 }
  0x91   :  { %v32_v8 = vmul.f32 0.03125, %v29_v7  ;;  %v35_v9 = vmul.f32 %v33_v6, %v33_v6 }
  0x93   :  { %v34_v10 = vsub.f32 %v22_v1, %v32_v8  ;;  %v37_v11 = vsel %vm23_vm0, %v35_v9, 0.0 }
  0x94   :  { %38 = vadd.xlane.f32.xlu1 %v37_v11 }
  0x95   :  { %v36_v12 = vmul.f32 %v34_v10, %v34_v10 }
  0x97   :  { %v40_v13 = vsel %vm23_vm0, %v36_v12, 0.0 }
  0x98   :  { %41 = vadd.xlane.f32.xlu1 %v40_v13 }
 0x11d   :  { %v39_v17 = vpop.xlane.xlu1 %38 }
 0x11e   :  { %v43_v18 = vmul.f32 0.03125, %v39_v17 }
 0x120   :  { %v45_v19 = vadd.f32 1e-05, %v43_v18 }
 0x121   :  { %v42_v20 = vpop.xlane.xlu1 %41 }
 0x122   :  { %199 = vrsqrt.f32 %v45_v19  ;;  %v44_v21 = vmul.f32 0.03125, %v42_v20 }
 0x124   :  { %v46_v22 = vadd.f32 1e-05, %v44_v21 }
 0x126   :  { %201 = vrsqrt.f32 %v46_v22 }
 0x12f   :  { %v200_v23 = vpop.eup %199 }
 0x130   :  { %v49_v24 = vmul.f32 %v200_v23, %v33_v6 }
 0x132   :  { %v58_v28 = vmul.f32 %v169_v25, %v49_v24 }
 0x133   :  { %v202_v26 = vpop.eup %201 }
 0x134   :  { %v50_v27 = vmul.f32 %v202_v26, %v34_v10  ;;  %v67_v31 = vadd.f32 %v170_v29, %v58_v28 }
 0x136   :  { %v59_v30 = vmul.f32 %v169_v25, %v50_v27 }
 0x138   :  { %v68_v32 = vadd.f32 %v170_v29, %v59_v30 }
 0x13a   :  { %v69_v33 = vpack.c.bf16 %v68_v32, %v67_v31 }
 0x13c   :  { %192 = vmatmul.mubr.msk.bf16.vlgmr.msra.gmra.mxu0 %vm23_vm0, %v69_v33 }
 0x1fc   :  { %v130_v35 = vpop.f32.mrf.mxu0 }
 0x1fd   :  { %v131_v36 = vadd.f32 %v171_v34, %v130_v35 }
 0x1fe   :  { %v193_v37 = vpop.f32.mrf.mxu0 }
 0x1ff   :  { %v137_v38 = vmul.f32 %v131_v36, %v131_v36 }
 0x200   :  { %v133_v39 = vpop.f32.mrf.mxu0 }
 0x201   :  { %v139_v40 = vmul.f32 %v137_v38, %v131_v36  ;;  %v134_v41 = vadd.f32 %v171_v34, %v133_v39 }
 0x202   :  { %v194_v42 = vpop.f32.mrf.mxu0 }
 0x203   :  { %v141_v43 = vmul.f32 0.044715, %v139_v40  ;;  %v138_v44 = vmul.f32 %v134_v41, %v134_v41 }
 0x205   :  { %v143_v45 = vadd.f32 %v141_v43, %v131_v36  ;;  %v140_v46 = vmul.f32 %v138_v44, %v134_v41 }
 0x207   :  { %v145_v47 = vmul.f32 0.7978846, %v143_v45  ;;  %v142_v48 = vmul.f32 0.044715, %v140_v46 }
 0x209   :  { %203 = vtanh.f32 %v145_v47  ;;  %v144_v49 = vadd.f32 %v142_v48, %v134_v41 }
 0x20b   :  { %v146_v50 = vmul.f32 0.7978846, %v144_v49 }
 0x20d   :  { %205 = vtanh.f32 %v146_v50 }
 0x216   :  { %v204_v51 = vpop.eup %203 }
 0x217   :  { %v149_v52 = vadd.f32 1.0, %v204_v51 }
 0x219   :  { %v151_v54 = vmul.f32 0.5, %v149_v52 }
 0x21a   :  { %v206_v53 = vpop.eup %205 }
 0x21b   :  { %v150_v55 = vadd.f32 1.0, %v206_v53  ;;  %v153_v57 = vmul.f32 %v151_v54, %v131_v36 }
 0x21d   :  { %v152_v56 = vmul.f32 0.5, %v150_v55 }
 0x21f   :  { %v154_v58 = vmul.f32 %v152_v56, %v134_v41 }
 0x221   :  { %v182_v59 = vpack.c.bf16 %v154_v58, %v153_v57 }
 0x223   :  { %183 = vst [vmem:[%s273_s5] sm:$0xff] %v182_v59  }

// kernel: esm2_forward.11
= control target key start
LH: loop header
LB: loop body
LE: loop exit
PB: predicated region body
PF: predicated region fallthrough
CT: control target
= control target key end

     0   :  { %vm23_vm0 = vcmask 261120   ;;  %v181_v14 = vmov 0.0   ;;  %vm182_vm1 = vmmov 0   ;;  %vm145_vm2 = vcmask 781312   ;;  %s245_s0 = inlined_call_operand.vmem [shape: f32[16,32], index: 0, kind: input, shape index: {}]   ;;  %s246_s3 = inlined_call_operand.vmem [shape: bf16[32,96], index: 3, kind: input, shape index: {}]   ;;  %s247_s1 = inlined_call_operand.vmem [shape: f32[1,32], index: 1, kind: input, shape index: {}]   ;;  %s248_s2 = inlined_call_operand.vmem [shape: f32[1,32], index: 2, kind: input, shape index: {}]   ;;  %s249_s4 = inlined_call_operand.vmem [shape: f32[1,96], index: 4, kind: input, shape index: {}]   ;;  %s250_s5 = inlined_call_operand.vmem [shape: bf16[16,96], index: 5, kind: output, shape index: {}]  }
   0x1   :  { %v21_v0 = vld [vmem:[%s245_s0] sm:$0xff]  ;;  %v22_v1 = vld [vmem:[%s245_s0 + $0x8] sm:$0xff]  ;;  %165 = vmatprep.subr.bf16.mxu0 %v181_v14  ;;  %169 = vmatprep.mubr.msk.bf16.mxu0 %vm182_vm1, %v181_v14 }
   0x2   :  { %v24_v2 = vsel %vm23_vm0, %v21_v0, 0.0  ;;  %v27_v3 = vsel %vm23_vm0, %v22_v1, 0.0  ;;  %v175_v15 = vld [vmem:[%s246_s3 + $0x8] sm:$0xff]   ;;  %v176_v16 = vld [vmem:[%s246_s3] sm:$0xff]  }
   0x3   :  { %25 = vadd.xlane.f32.xlu0 %v24_v2  ;;  %166 = vmatpush3.bf16.msra.mxu0 %v175_v15  ;;  %v152_v25 = vld [vmem:[%s247_s1] ss:$0 sm:$0xff] }
   0x4   :  { %167 = vmatprep.subr.bf16.mxu0 %v181_v14  ;;  %v153_v29 = vld [vmem:[%s248_s2] ss:$0 sm:$0xff] }
   0x5   :  { %v154_v34 = vld [vmem:[%s249_s4] ss:$0 sm:$0xff] }
   0x7   :  { %28 = vadd.xlane.f32.xlu0 %v27_v3  ;;  %168 = vmatpush3.bf16.msra.mxu0 %v176_v16 }
  0x8c   :  { %v26_v4 = vpop.xlane.xlu0 %25 }
  0x8d   :  { %v31_v5 = vmul.f32 0.03125, %v26_v4 }
  0x8f   :  { %v33_v6 = vsub.f32 %v21_v0, %v31_v5 }
  0x90   :  { %v29_v7 = vpop.xlane.xlu0 %28 }
  0x91   :  { %v32_v8 = vmul.f32 0.03125, %v29_v7  ;;  %v35_v9 = vmul.f32 %v33_v6, %v33_v6 }
  0x93   :  { %v34_v10 = vsub.f32 %v22_v1, %v32_v8  ;;  %v37_v11 = vsel %vm23_vm0, %v35_v9, 0.0 }
  0x94   :  { %38 = vadd.xlane.f32.xlu1 %v37_v11 }
  0x95   :  { %v36_v12 = vmul.f32 %v34_v10, %v34_v10 }
  0x97   :  { %v40_v13 = vsel %vm23_vm0, %v36_v12, 0.0 }
  0x98   :  { %41 = vadd.xlane.f32.xlu1 %v40_v13 }
 0x11d   :  { %v39_v17 = vpop.xlane.xlu1 %38 }
 0x11e   :  { %v43_v18 = vmul.f32 0.03125, %v39_v17 }
 0x120   :  { %v45_v19 = vadd.f32 1e-05, %v43_v18 }
 0x121   :  { %v42_v20 = vpop.xlane.xlu1 %41 }
 0x122   :  { %177 = vrsqrt.f32 %v45_v19  ;;  %v44_v21 = vmul.f32 0.03125, %v42_v20 }
 0x124   :  { %v46_v22 = vadd.f32 1e-05, %v44_v21 }
 0x126   :  { %179 = vrsqrt.f32 %v46_v22 }
 0x12f   :  { %v178_v23 = vpop.eup %177 }
 0x130   :  { %v49_v24 = vmul.f32 %v178_v23, %v33_v6 }
 0x132   :  { %v58_v28 = vmul.f32 %v152_v25, %v49_v24 }
 0x133   :  { %v180_v26 = vpop.eup %179 }
 0x134   :  { %v50_v27 = vmul.f32 %v180_v26, %v34_v10  ;;  %v67_v31 = vadd.f32 %v153_v29, %v58_v28 }
 0x136   :  { %v59_v30 = vmul.f32 %v152_v25, %v50_v27 }
 0x138   :  { %v68_v32 = vadd.f32 %v153_v29, %v59_v30 }
 0x13a   :  { %v69_v33 = vpack.c.bf16 %v68_v32, %v67_v31 }
 0x13c   :  { %170 = vmatmul.mubr.msk.bf16.vlgmr.msra.gmra.mxu0 %vm23_vm0, %v69_v33 }
 0x1fc   :  { %v130_v35 = vpop.f32.mrf.mxu0 }
 0x1fd   :  { %v131_v36 = vadd.f32 %v154_v34, %v130_v35 }
 0x1fe   :  { %v171_v37 = vpop.f32.mrf.mxu0 }
 0x1ff   :  { %v160_v38 = vpack.c.bf16 %v131_v36, %v131_v36 }
 0x200   :  { %v133_v39 = vpop.f32.mrf.mxu0 }
 0x201   :  { %146 = vst.msk [vmem:[%s250_s5] sm:$0xf] %vm145_vm2, %v160_v38  ;;  %v134_v40 = vadd.f32 %v154_v34, %v133_v39 }
 0x202   :  { %v172_v41 = vpop.f32.mrf.mxu0 }
 0x203   :  { %v161_v42 = vpack.c.bf16 %v134_v40, %v134_v40 }
 0x205   :  { %147 = vst.msk [vmem:[%s250_s5 + $0x4] sm:$0xf] %vm145_vm2, %v161_v42 }

// kernel: esm2_forward.12
= control target key start
LH: loop header
LB: loop body
LE: loop exit
PB: predicated region body
PF: predicated region fallthrough
CT: control target
= control target key end

     0   :  { %s1004_s12 = smov 0   ;;  %s1171_s0 = inlined_call_operand.vmem [shape: bf16[2,8,96], index: 0, kind: input, shape index: {}]   ;;  %s1172_s1 = inlined_call_operand.vmem [shape: f32[8,8], index: 1, kind: input, shape index: {}]   ;;  %s1173_s2 = inlined_call_operand.vmem [shape: f32[8,8], index: 2, kind: input, shape index: {}]   ;;  %s1174_s3 = inlined_call_operand.vmem [shape: bf16[2,8,32], index: 3, kind: output, shape index: {}]  }
   0x1 LB: > { %s817_s13 = sadd.s32 4294967295, %s956_s12   ;;  %p821_p0 = scmp.ge.s32.totalorder %s956_s12, 1  ;;  %s956_s12 = sphi %s1004_s12, %s13_s12  }
   0x2   : > { %p136_p1 = scmp.lt.s32.totalorder %s956_s12, 3 }
   0x4   : > { %p137_p2 = pnand %p821_p0, %p136_p1 }
   0x5   : > { %p158_p3 = scmp.lt.s32.totalorder (!%p137_p2), %s817_s13, 1  ;;  %s958_s16 = smov (!%p137_p2), 32  }
   0x6   : > { %140 = sbr.rel (%p137_p2) target bundleno = 1423 (0x58f), region = 32  ;;  %s959_s21 = smov (!%p137_p2), 92  }
   0x7   : > { %s960_s22 = smov (!%p137_p2), 100   ;;  %s961_s23 = smov (!%p137_p2), 124  }
   0x8   : > { %s962_s26 = smov (!%p137_p2), 4   ;;  %s963_s27 = smov (!%p137_p2), 84  }
   0x9   : > { %s964_s28 = smov (!%p137_p2), 76   ;;  %s965_s29 = smov (!%p137_p2), 68  }
   0xa   : > { %s968_s30 = smov (!%p137_p2), 96   ;;  %s969_s4 = smov (!%p137_p2), 116  }
   0xb   : > { %v1015_v0 = vld [vmem:[%s1172_s1] sm:$0xff]  ;;  %s1176_s13 = smov (!%p158_p3, %s817_s13), 1  ;;  %vm178_vm0 = vcmask 31744   ;;  %v966_v8 = vmov 0.0   ;;  %vm967_vm1 = vmmov 0   ;;  %s970_s5 = smov 40  }
   0xc   : > { %193 = vrot.lane.b32.xlu1 %v1015_v0, %s958_s16  ;;  %s822_s17 = sshll.u32 %s1176_s13, 2  ;;  %v1037_v4 = vld [vmem:[%s1173_s2] sm:$0xff]  ;;  %851 = vmatprep.subr.bf16.mxu0 %v966_v8  ;;  %s971_s6 = smov 108   ;;  %vm207_vm2 = vcmask 64512   ;;  %vm272_vm3 = vcmask 1043456   ;;  %vm757_vm4 = vcmask 130048  }
   0xd   : > { %s161_s20 = scalar_lea.vmem %s1171_s0, %s822_s17  ;;  %857 = vmatprep.subr.bf16.mxu1 %v966_v8  ;;  %853 = vmatprep.mubr.msk.bf16.mxu0 %vm967_vm1, %v966_v8  ;;  %s972_s7 = smov 8   ;;  %vm759_vm5 = vcmask 195584   ;;  %vm762_vm6 = vcmask 257024  }
   0xe   : > { %v1026_v1 = vld [vmem:[%s161_s20] sm:$0xf]  ;;  %859 = vmatprep.mubr.msk.bf16.mxu1 %vm967_vm1, %v966_v8  ;;  %s973_s8 = smov 48   ;;  %s974_s9 = smov 16  }
   0xf   : > { %v1029_v2 = vunpack.c.l.bf16 %v1026_v1  ;;  %s975_s10 = smov 56   ;;  %s976_s11 = smov 24   ;;  %v1100_v43 = vcombine.low %v1026_v1, %v1026_v1 }
  0x10   : > { %s977_s14 = smov 64   ;;  %s978_s15 = smov 88  }
  0x11   : > { %185 = vrot.lane.b32.xlu0 %v1029_v2, %s959_s21  ;;  %v180_v20 = vmul.f32 %v1029_v2, %v1015_v0  ;;  %s980_s18 = smov 80   ;;  %s981_s19 = smov 112  }
  0x12   : > { %s982_s20 = smov 72   ;;  %s983_s21 = smov 104  }
  0x13   : > { %s165_s24 = scalar_lea.vmem %s1174_s3, %s822_s17 }
  0x15   : > { %188 = vrot.lane.b32.xlu0 %v1029_v2, %s960_s22 }
  0x19   : > { %172 = vrot.lane.b32.xlu0 %v1029_v2, %s961_s23 }
  0x7e   : > { %v194_v9 = vpop.permute.xlu1 %193 }
  0x7f   : > { %v196_v10 = vmul.f32 %v194_v9, %v1029_v2 }
  0x83   : > { %v186_v3 = vpop.permute.xlu0 %185 }
  0x87   : > { %v1039_v5 = vpop.permute.xlu0 %188 }
  0x88   : > { %v191_v6 = vsel %vm178_vm0, %v186_v3, %v1039_v5 }
  0x89   : > { %v197_v7 = vmul.f32 %v191_v6, %v1037_v4 }
  0x8b   : > { %199 = vrot.lane.b32.xlu1 %v197_v7, %s958_s16  ;;  %v173_v18 = vpop.permute.xlu0 %172  ;;  %s979_s16 = smov 120  }
  0x8f   : > { %175 = vrot.lane.b32.xlu1 %v1029_v2, %s962_s26 }
  0x93   : > { %334 = vrot.lane.b32.xlu1 %v1029_v2, %s963_s27 }
  0x97   : > { %477 = vrot.lane.b32.xlu1 %v1029_v2, %s964_s28 }
  0x9b   : > { %617 = vrot.lane.b32.xlu1 %v1029_v2, %s965_s29 }
  0xfd   : > { %v200_v11 = vpop.permute.xlu1 %199 }
  0xfe   : > { %v202_v12 = vadd.f32 %v200_v11, %v196_v10 }
 0x100   : > { %v203_v13 = vpack.c.bf16 %v202_v12, %v202_v12 }
 0x101   : > { %v176_v14 = vpop.permute.xlu1 %175 }
 0x102   : > { %205 = vrot.lane.b32.xlu0 %v203_v13, %s968_s30  ;;  %v179_v19 = vsel %vm178_vm0, %v173_v18, %v176_v14 }
 0x103   : > { %v181_v21 = vmul.f32 %v179_v19, %v1037_v4 }
 0x105   : > { %v335_v15 = vpop.permute.xlu1 %334  ;;  %v182_v22 = vadd.f32 %v181_v21, %v180_v20 }
 0x106   : > { %v337_v16 = vsel %vm178_vm0, %v335_v15, %v186_v3  ;;  %318 = vrot.lane.b32.xlu0 %v1029_v2, %s969_s4 }
 0x107   : > { %v342_v17 = vmul.f32 %v337_v16, %v1037_v4  ;;  %v183_v25 = vmul.f32 0.35355338, %v182_v22 }
 0x109   : > { %344 = vrot.lane.b32.xlu1 %v342_v17, %s970_s5  ;;  %v478_v26 = vpop.permute.xlu1 %477  ;;  %v184_v31 = vpack.c.bf16 %v183_v25, %v183_v25 }
 0x10a   : > { %461 = vrot.lane.b32.xlu0 %v1029_v2, %s971_s6  ;;  %v480_v28 = vsel %vm178_vm0, %v478_v26, %v335_v15 }
 0x10b   : > { %v485_v32 = vmul.f32 %v480_v28, %v1037_v4 }
 0x10d   : > { %v618_v35 = vpop.permute.xlu1 %617 }
 0x10e   : > { %338 = vrot.lane.b32.xlu0 %v1015_v0, %s970_s5  ;;  %v620_v37 = vsel %vm178_vm0, %v618_v35, %v478_v26 }
 0x10f   : > { %v625_v38 = vmul.f32 %v620_v37, %v1037_v4 }
 0x112   : > { %322 = vrot.lane.b32.xlu0 %v1015_v0, %s972_s7 }
 0x116   : > { %481 = vrot.lane.b32.xlu0 %v1015_v0, %s973_s8 }
 0x11a   : > { %465 = vrot.lane.b32.xlu0 %v1015_v0, %s974_s9 }
 0x11e   : > { %621 = vrot.lane.b32.xlu0 %v1015_v0, %s975_s10 }
 0x122   : > { %605 = vrot.lane.b32.xlu0 %v1015_v0, %s976_s11 }
 0x174   : > { %v206_v23 = vpop.permute.xlu0 %205 }
 0x175   : > { %v212_v24 = vsel %vm207_vm2, %v206_v23, 0 }
 0x176   : > { %852 = vmatpush3.bf16.xpose.msra.mxu0 %v212_v24 }
 0x177   : > { %869 = vmatprep.subr.bf16.mxu0 %v966_v8 }
 0x178   : > { %v319_v27 = vpop.permute.xlu0 %318 }
 0x179   : > { %v321_v29 = vsel %vm178_vm0, %v319_v27, %v173_v18 }
 0x17a   : > { %v326_v30 = vmul.f32 %v321_v29, %v1037_v4 }
 0x17b   : > { %v345_v44 = vpop.permute.xlu1 %344 }
 0x17c   : > { %328 = vrot.lane.b32.xlu1 %v326_v30, %s972_s7  ;;  %v462_v33 = vpop.permute.xlu0 %461 }
 0x17d   : > { %v464_v34 = vsel %vm178_vm0, %v462_v33, %v319_v27  ;;  %854 = vmatmul.mubr.msk.bf16.vlgmr.msra.gmra.mxu0 %vm207_vm2, %v184_v31  ;;  %v604_v39 = vsel %vm178_vm0, %v1039_v5, %v462_v33 }
 0x17e   : > { %871 = vmatprep.mubr.msk.bf16.mxu0 %vm967_vm1, %v966_v8  ;;  %v469_v36 = vmul.f32 %v464_v34, %v1037_v4  ;;  %v609_v41 = vmul.f32 %v604_v39, %v1037_v4 }
 0x180   : > { %487 = vrot.lane.b32.xlu1 %v485_v32, %s973_s8  ;;  %v339_v40 = vpop.permute.xlu0 %338 }
 0x181   : > { %v341_v42 = vmul.f32 %v339_v40, %v1029_v2 }
 0x183   : > { %v347_v45 = vadd.f32 %v345_v44, %v341_v42 }
 0x184   : > { %471 = vrot.lane.b32.xlu1 %v469_v36, %s974_s9  ;;  %v323_v47 = vpop.permute.xlu0 %322 }
 0x185   : > { %v348_v46 = vpack.c.bf16 %v347_v45, %v347_v45  ;;  %v325_v49 = vmul.f32 %v323_v47, %v1029_v2 }
 0x188   : > { %627 = vrot.lane.b32.xlu1 %v625_v38, %s975_s10  ;;  %v482_v48 = vpop.permute.xlu0 %481 }
 0x189   : > { %v484_v53 = vmul.f32 %v482_v48, %v1029_v2 }
 0x18c   : > { %611 = vrot.lane.b32.xlu1 %v609_v41, %s976_s11  ;;  %v466_v50 = vpop.permute.xlu0 %465 }
 0x18d   : > { %v468_v59 = vmul.f32 %v466_v50, %v1029_v2 }
 0x190   : > { %267 = vrot.lane.b32.xlu1 %v1100_v43, %s977_s14  ;;  %v622_v56 = vpop.permute.xlu0 %621 }
 0x191   : > { %v624_v63 = vmul.f32 %v622_v56, %v1029_v2 }
 0x194   : > { %353 = vrot.lane.b32.xlu1 %v348_v46, %s978_s15  ;;  %v606_v0 = vpop.permute.xlu0 %605 }
 0x195   : > { %v608_v6 = vmul.f32 %v606_v0, %v1029_v2 }
 0x1ee   : > { %v329_v51 = vpop.permute.xlu1 %328 }
 0x1ef   : > { %v331_v52 = vadd.f32 %v329_v51, %v325_v49 }
 0x1f1   : > { %v332_v54 = vmul.f32 0.35355338, %v331_v52 }
 0x1f2   : > { %v488_v55 = vpop.permute.xlu1 %487 }
 0x1f3   : > { %v333_v57 = vpack.c.bf16 %v332_v54, %v332_v54  ;;  %v490_v58 = vadd.f32 %v488_v55, %v484_v53 }
 0x1f5   : > { %v491_v60 = vpack.c.bf16 %v490_v58, %v490_v58  ;;  %350 = vrot.lane.b32.xlu1 %v333_v57, %s979_s16 }
 0x1f6   : > { %v472_v61 = vpop.permute.xlu1 %471 }
 0x1f7   : > { %v474_v62 = vadd.f32 %v472_v61, %v468_v59 }
 0x1f9   : > { %v475_v1 = vmul.f32 0.35355338, %v474_v62  ;;  %496 = vrot.lane.b32.xlu1 %v491_v60, %s980_s18 }
 0x1fa   : > { %v628_v3 = vpop.permute.xlu1 %627 }
 0x1fb   : > { %v476_v4 = vpack.c.bf16 %v475_v1, %v475_v1  ;;  %v630_v5 = vadd.f32 %v628_v3, %v624_v63 }
 0x1fd   : > { %v631_v7 = vpack.c.bf16 %v630_v5, %v630_v5  ;;  %493 = vrot.lane.b32.xlu1 %v476_v4, %s981_s19 }
 0x1fe   : > { %v612_v9 = vpop.permute.xlu1 %611 }
 0x1ff   : > { %v614_v10 = vadd.f32 %v612_v9, %v608_v6 }
 0x201   : > { %v615_v11 = vmul.f32 0.35355338, %v614_v10  ;;  %636 = vrot.lane.b32.xlu1 %v631_v7, %s982_s20 }
 0x202   : > { %v268_v18 = vpop.permute.xlu1 %267 }
 0x203   : > { %v616_v12 = vpack.c.bf16 %v615_v11, %v615_v11  ;;  %v274_v2 = vsel %vm272_vm3, %v268_v18, 0 }
 0x204   : > { %858 = vmatpush3.bf16.msra.mxu1 %v274_v2 }
 0x205   : > { %633 = vrot.lane.b32.xlu1 %v616_v12, %s983_s21  ;;  %863 = vmatprep.subr.bf16.mxu1 %v966_v8 }
 0x206   : > { %v354_v22 = vpop.permute.xlu1 %353 }
 0x207   : > { %v359_v26 = vsel %vm207_vm2, %v354_v22, 0 }
 0x23d   : > { %v248_v13 = vpop.f32.mrf.mxu0 }
 0x23e   : > { %v254_v14 = vsel %vm207_vm2, %v248_v13, -inf }
 0x23f   : > { %255 = vmax.xlane.f32.xlu0 %v254_v14  ;;  %v855_v15 = vpop.f32.mrf.mxu0 }
 0x241   : > { %v251_v16 = vpop.f32.mrf.mxu0 }
 0x243   : > { %v856_v17 = vpop.f32.mrf.mxu0 }
 0x255   : > { %411 = vrot.lane.b32.xlu0 %v1100_v43, %s975_s10 }
 0x267   : > { %v351_v24 = vpop.permute.xlu1 %350 }
 0x26b   : > { %v497_v27 = vpop.permute.xlu1 %496 }
 0x26c   : > { %v502_v28 = vsel %vm207_vm2, %v497_v27, 0 }
 0x26f   : > { %v494_v29 = vpop.permute.xlu1 %493 }
 0x273   : > { %v637_v30 = vpop.permute.xlu1 %636 }
 0x274   : > { %v642_v31 = vsel %vm207_vm2, %v637_v30, 0 }
 0x277   : > { %v634_v32 = vpop.permute.xlu1 %633 }
 0x2c8   : > { %v256_v19 = vpop.xlane.xlu0 %255 }
 0x2c9   : > { %v257_v20 = vsub.f32 %v248_v13, %v256_v19 }
 0x2cb   : > { %v258_v21 = vmul.f32 1.442695, %v257_v20 }
 0x2cc   : > { %v412_v33 = vpop.permute.xlu0 %411 }
 0x2cd   : > { %934 = vpow2.f32 %v258_v21  ;;  %v417_v34 = vsel %vm272_vm3, %v412_v33, 0 }
 0x2ce   : > { %870 = vmatpush3.bf16.msra.mxu0 %v417_v34 }
 0x2cf   : > { %881 = vmatprep.subr.bf16.mxu0 %v966_v8 }
 0x2da   : > { %v1113_v23 = vpop.eup %934 }
 0x2db   : > { %v263_v25 = vpack.c.bf16 %v1113_v23, %v1113_v23  ;;  %v260_v14 = vsel %vm207_vm2, %v1113_v23, 0.0 }
 0x2dd   : > { %860 = vmatmul.mubr.msk.bf16.vlgmr.msra.gmra.mxu1 %vm207_vm2, %v263_v25 }
 0x2de   : > { %864 = vmatpush3.bf16.xpose.msra.mxu1 %v359_v26  ;;  %865 = vmatprep.mubr.msk.bf16.mxu1 %vm967_vm1, %v966_v8 }
 0x2df   : > { %875 = vmatprep.subr.bf16.mxu1 %v966_v8 }
 0x2e5   : > { %866 = vmatmul.mubr.msk.bf16.vlgmr.msra.gmra.mxu1 %vm207_vm2, %v351_v24 }
 0x2e6   : > { %876 = vmatpush3.bf16.xpose.msra.mxu1 %v502_v28  ;;  %877 = vmatprep.mubr.msk.bf16.mxu1 %vm967_vm1, %v966_v8 }
 0x2e7   : > { %887 = vmatprep.subr.bf16.mxu1 %v966_v8 }
 0x2ed   : > { %878 = vmatmul.mubr.msk.bf16.vlgmr.msra.gmra.mxu1 %vm207_vm2, %v494_v29 }
 0x2ee   : > { %888 = vmatpush3.bf16.xpose.msra.mxu1 %v642_v31  ;;  %889 = vmatprep.mubr.msk.bf16.mxu1 %vm967_vm1, %v966_v8 }
 0x2f5   : > { %890 = vmatmul.mubr.msk.bf16.vlgmr.msra.gmra.mxu1 %vm207_vm2, %v634_v32 }
 0x39d   : > { %v1134_v35 = vpop.f32.mrf.mxu1 }
 0x39f   : > { %v861_v36 = vpop.f32.mrf.mxu1 }
 0x3a1   : > { %v313_v37 = vpop.f32.mrf.mxu1 }
 0x3a3   : > { %v862_v38 = vpop.f32.mrf.mxu1 }
 0x3a5   : > { %v395_v39 = vpop.f32.mrf.mxu1 }
 0x3a6   : > { %v401_v40 = vsel %vm207_vm2, %v395_v39, -inf }
 0x3a7   : > { %402 = vmax.xlane.f32.xlu1 %v401_v40  ;;  %v867_v41 = vpop.f32.mrf.mxu1 }
 0x3a9   : > { %v398_v42 = vpop.f32.mrf.mxu1 }
 0x3ab   : > { %v868_v44 = vpop.f32.mrf.mxu1 }
 0x3ad   : > { %v538_v45 = vpop.f32.mrf.mxu1 }
 0x3ae   : > { %v544_v46 = vsel %vm207_vm2, %v538_v45, -inf }
 0x3af   : > { %545 = vmax.xlane.f32.xlu0 %v544_v46  ;;  %v879_v47 = vpop.f32.mrf.mxu1 }
 0x3b1   : > { %v541_v48 = vpop.f32.mrf.mxu1 }
 0x3b3   : > { %v880_v49 = vpop.f32.mrf.mxu1 }
 0x3b5   : > { %v678_v50 = vpop.f32.mrf.mxu1 }
 0x3b6   : > { %v684_v51 = vsel %vm207_vm2, %v678_v50, -inf }
 0x3b7   : > { %685 = vmax.xlane.f32.xlu0 %v684_v51  ;;  %v891_v52 = vpop.f32.mrf.mxu1 }
 0x3b8   : > { %694 = vrot.lane.b32.xlu1 %v1100_v43, %s970_s5 }
 0x3b9   : > { %v681_v53 = vpop.f32.mrf.mxu1 }
 0x3bb   : > { %v892_v54 = vpop.f32.mrf.mxu1 }
 0x3cd   : > { %554 = vrot.lane.b32.xlu0 %v1100_v43, %s973_s8 }
 0x430   : > { %v403_v55 = vpop.xlane.xlu1 %402 }
 0x431   : > { %v404_v56 = vsub.f32 %v395_v39, %v403_v55 }
 0x433   : > { %v405_v57 = vmul.f32 1.442695, %v404_v56 }
 0x434   : > { %v695_v5 = vpop.permute.xlu1 %694 }
 0x435   : > { %936 = vpow2.f32 %v405_v57  ;;  %v700_v7 = vsel %vm272_vm3, %v695_v5, 0 }
 0x438   : > { %v546_v58 = vpop.xlane.xlu0 %545 }
 0x439   : > { %v547_v59 = vsub.f32 %v538_v45, %v546_v58 }
 0x43b   : > { %v548_v60 = vmul.f32 1.442695, %v547_v59 }
 0x43d   : > { %938 = vpow2.f32 %v548_v60 }
 0x440   : > { %v686_v61 = vpop.xlane.xlu0 %685 }
 0x441   : > { %v687_v62 = vsub.f32 %v678_v50, %v686_v61 }
 0x442   : > { %v937_v63 = vpop.eup %936 }
 0x443   : > { %v688_v0 = vmul.f32 1.442695, %v687_v62  ;;  %v407_v1 = vsel %vm207_vm2, %v937_v63, 0.0  ;;  %v410_v3 = vpack.c.bf16 %v937_v63, %v937_v63 }
 0x444   : > { %408 = vadd.xlane.f32.xlu0 %v407_v1  ;;  %v555_v4 = vpop.permute.xlu0 %554 }
 0x445   : > { %940 = vpow2.f32 %v688_v0  ;;  %v560_v43 = vsel %vm272_vm3, %v555_v4, 0  ;;  %872 = vmatmul.mubr.msk.bf16.vlgmr.msra.gmra.mxu0 %vm207_vm2, %v410_v3 }
 0x446   : > { %882 = vmatpush3.bf16.msra.mxu0 %v560_v43  ;;  %883 = vmatprep.mubr.msk.bf16.mxu0 %vm967_vm1, %v966_v8 }
 0x447   : > { %893 = vmatprep.subr.bf16.mxu0 %v966_v8 }
 0x44a   : > { %v939_v6 = vpop.eup %938 }
 0x44b   : > { %v550_v9 = vsel %vm207_vm2, %v939_v6, 0.0  ;;  %v553_v10 = vpack.c.bf16 %v939_v6, %v939_v6 }
 0x44c   : > { %551 = vadd.xlane.f32.xlu1 %v550_v9 }
 0x44d   : > { %884 = vmatmul.mubr.msk.bf16.vlgmr.msra.gmra.mxu0 %vm207_vm2, %v553_v10 }
 0x44e   : > { %894 = vmatpush3.bf16.msra.mxu0 %v700_v7  ;;  %895 = vmatprep.mubr.msk.bf16.mxu0 %vm967_vm1, %v966_v8 }
 0x452   : > { %v941_v11 = vpop.eup %940 }
 0x453   : > { %v690_v12 = vsel %vm207_vm2, %v941_v11, 0.0  ;;  %v693_v13 = vpack.c.bf16 %v941_v11, %v941_v11 }
 0x454   : > { %691 = vadd.xlane.f32.xlu0 %v690_v12 }
 0x455   : > { %896 = vmatmul.mubr.msk.bf16.vlgmr.msra.gmra.mxu0 %vm207_vm2, %v693_v13 }
 0x458   : > { %261 = vadd.xlane.f32.xlu0 %v260_v14 }
 0x4cd   : > { %v409_v15 = vpop.xlane.xlu0 %408 }
 0x4ce   : > { %942 = vrcp.f32 %v409_v15 }
 0x4d5   : > { %v552_v16 = vpop.xlane.xlu1 %551 }
 0x4d6   : > { %944 = vrcp.f32 %v552_v16 }
 0x4db   : > { %v943_v17 = vpop.eup %942 }
 0x4dd   : > { %v692_v18 = vpop.xlane.xlu0 %691 }
 0x4de   : > { %946 = vrcp.f32 %v692_v18 }
 0x4e1   : > { %v262_v34 = vpop.xlane.xlu0 %261 }
 0x4e2   : > { %948 = vrcp.f32 %v262_v34 }
 0x4e3   : > { %v945_v22 = vpop.eup %944 }
 0x4eb   : > { %v947_v28 = vpop.eup %946 }
 0x4ef   : > { %v949_v36 = vpop.eup %948 }
 0x4f0   : > { %v317_v38 = vmul.f32 %v949_v36, %v1134_v35 }
 0x505   : > { %v453_v2 = vpop.f32.mrf.mxu0 }
 0x506   : > { %v460_v19 = vmul.f32 %v943_v17, %v453_v2 }
 0x507   : > { %v873_v8 = vpop.f32.mrf.mxu0 }
 0x508   : > { %745 = vrot.lane.b32.xlu0 %v460_v19, %s972_s7 }
 0x509   : > { %v456_v20 = vpop.f32.mrf.mxu0 }
 0x50b   : > { %v874_v21 = vpop.f32.mrf.mxu0 }
 0x50d   : > { %v596_v24 = vpop.f32.mrf.mxu0 }
 0x50e   : > { %v603_v25 = vmul.f32 %v945_v22, %v596_v24 }
 0x50f   : > { %v885_v26 = vpop.f32.mrf.mxu0 }
 0x510   : > { %749 = vrot.lane.b32.xlu1 %v603_v25, %s974_s9 }
 0x511   : > { %v599_v23 = vpop.f32.mrf.mxu0 }
 0x513   : > { %v886_v27 = vpop.f32.mrf.mxu0 }
 0x515   : > { %v736_v29 = vpop.f32.mrf.mxu0 }
 0x516   : > { %v743_v30 = vmul.f32 %v947_v28, %v736_v29 }
 0x517   : > { %v897_v31 = vpop.f32.mrf.mxu0 }
 0x518   : > { %753 = vrot.lane.b32.xlu0 %v743_v30, %s976_s11 }
 0x519   : > { %v739_v32 = vpop.f32.mrf.mxu0 }
 0x51b   : > { %v898_v33 = vpop.f32.mrf.mxu0 }
 0x57a   : > { %v746_v37 = vpop.permute.xlu0 %745 }
 0x57b   : > { %v756_v40 = vsel %vm207_vm2, %v317_v38, %v746_v37 }
 0x582   : > { %v750_v39 = vpop.permute.xlu1 %749 }
 0x583   : > { %v758_v41 = vsel %vm757_vm4, %v756_v40, %v750_v39 }
 0x58a   : > { %v754_v42 = vpop.permute.xlu0 %753 }
 0x58b   : > { %v760_v44 = vsel %vm759_vm5, %v758_v41, %v754_v42 }
 0x58c   : > { %v761_v45 = vpack.c.bf16 %v760_v44, %v760_v44 }
 0x58e   : > { %763 = vst.msk [vmem:[%s165_s24] sm:$0xf] %vm762_vm6, %v761_v45 }
 0x58f PF: > { %s13_s12 = sadd.s32 1, %s956_s12  }
 0x590   : > { %p10_p4 = scmp.ge.s32.totalorder %s13_s12, 4  }
 0x592   :  { %12 = sbr.rel (!%p10_p4) target bundleno = 1 (0x1), region = 62 }

// kernel: esm2_forward.15
= control target key start
LH: loop header
LB: loop body
LE: loop exit
PB: predicated region body
PF: predicated region fallthrough
CT: control target
= control target key end

     0   :  { %vm22_vm0 = vcmask 261120   ;;  %v219_v0 = vmov 0.0   ;;  %vm220_vm1 = vmmov 0   ;;  %s294_s1 = inlined_call_operand.vmem [shape: bf16[128,32], index: 1, kind: input, shape index: {}]   ;;  %s295_s0 = inlined_call_operand.vmem [shape: bf16[16,128], index: 0, kind: input, shape index: {}]   ;;  %s296_s2 = inlined_call_operand.vmem [shape: f32[1,32], index: 2, kind: input, shape index: {}]   ;;  %s297_s3 = inlined_call_operand.vmem [shape: f32[16,32], index: 3, kind: input, shape index: {}]   ;;  %s298_s4 = inlined_call_operand.vmem [shape: f32[16,32], index: 4, kind: output, shape index: {}]  }
   0x1   :  { %188 = vmatprep.subr.bf16.mxu0 %v219_v0  ;;  %v210_v1 = vld [vmem:[%s294_s1 + $0x38] sm:$0xff]   ;;  %204 = vmatprep.mubr.msk.bf16.mxu0 %vm220_vm1, %v219_v0  ;;  %23 = vst.msk [vmem:[#allocation2] sm:$0xff] %vm22_vm0, %v219_v0  ;;  %24 = vst.msk [vmem:[#allocation2 + $0x8] sm:$0xff] %vm22_vm0, %v219_v0  ;;  %v211_v2 = vld [vmem:[%s294_s1 + $0x30] sm:$0xff]  }
   0x2   :  { %189 = vmatpush3.bf16.msra.mxu0 %v210_v1  ;;  %v212_v3 = vld [vmem:[%s294_s1 + $0x28] sm:$0xff]   ;;  %v213_v4 = vld [vmem:[%s294_s1 + $0x20] sm:$0xff]   ;;  %v214_v5 = vld [vmem:[%s294_s1 + $0x18] sm:$0xff]  }
   0x3   :  { %190 = vmatprep.subr.bf16.mxu0 %v219_v0  ;;  %v215_v6 = vld [vmem:[%s294_s1 + $0x10] sm:$0xff]   ;;  %v216_v7 = vld [vmem:[%s294_s1 + $0x8] sm:$0xff]   ;;  %v217_v8 = vld [vmem:[%s294_s1] sm:$0xff]  }
   0x4   :  { %v218_v9 = vld [vmem:[%s295_s0] sm:$0xff]   ;;  %v160_v23 = vld [vmem:[%s297_s3 + $0x8] sm:$0xff] }
   0x5   :  { %v178_v18 = vld [vmem:[%s296_s2] ss:$0 sm:$0xff] }
   0x6   :  { %191 = vmatpush3.bf16.msra.mxu0 %v211_v2  ;;  %v159_v20 = vld [vmem:[%s297_s3] sm:$0xff] }
   0x7   :  { %192 = vmatprep.subr.bf16.mxu0 %v219_v0 }
   0x8   :  { %v25_v10 = vld [vmem:[#allocation2] sm:$0xff]  ;;  %v26_v14 = vld [vmem:[#allocation2 + $0x8] sm:$0xff] }
   0xa   :  { %193 = vmatpush3.bf16.msra.mxu0 %v212_v3 }
   0xb   :  { %194 = vmatprep.subr.bf16.mxu0 %v219_v0 }
   0xe   :  { %195 = vmatpush3.bf16.msra.mxu0 %v213_v4 }
   0xf   :  { %196 = vmatprep.subr.bf16.mxu0 %v219_v0 }
  0x12   :  { %197 = vmatpush3.bf16.msra.mxu0 %v214_v5 }
  0x13   :  { %198 = vmatprep.subr.bf16.mxu0 %v219_v0 }
  0x16   :  { %199 = vmatpush3.bf16.msra.mxu0 %v215_v6 }
  0x17   :  { %200 = vmatprep.subr.bf16.mxu0 %v219_v0 }
  0x1a   :  { %201 = vmatpush3.bf16.msra.mxu0 %v216_v7 }
  0x1b   :  { %202 = vmatprep.subr.bf16.mxu0 %v219_v0 }
  0x1e   :  { %203 = vmatpush3.bf16.msra.mxu0 %v217_v8 }
  0x21   :  { %205 = vmatmul.mubr.bf16.vlgmr.msra.gmra.mxu0 %v218_v9 }
  0xe1   :  { %v133_v11 = vpop.f32.mrf.mxu0 }
  0xe2   :  { %v140_v12 = vadd.f32 %v133_v11, %v25_v10 }
  0xe3   :  { %v206_v13 = vpop.f32.mrf.mxu0 }
  0xe4   :  { %143 = vst.msk [vmem:[#allocation2] sm:$0xff] %vm22_vm0, %v140_v12 }
  0xe5   :  { %v136_v15 = vpop.f32.mrf.mxu0 }
  0xe6   :  { %v141_v16 = vadd.f32 %v136_v15, %v26_v14 }
  0xe7   :  { %v207_v17 = vpop.f32.mrf.mxu0 }
  0xe8   :  { %144 = vst.msk [vmem:[#allocation2 + $0x8] sm:$0xff] %vm22_vm0, %v141_v16 }
  0xeb   :  { %v148_v19 = vld [vmem:[#allocation2] sm:$0xff] }
  0xec   :  { %v157_v21 = vadd.f32 %v178_v18, %v148_v19 }
  0xee   :  { %v161_v22 = vadd.f32 %v159_v20, %v157_v21 }
  0xef   :  { %v149_v24 = vld [vmem:[#allocation2 + $0x8] sm:$0xff] }
  0xf0   :  { %163 = vst.msk [vmem:[%s298_s4] sm:$0xff] %vm22_vm0, %v161_v22  ;;  %v158_v25 = vadd.f32 %v178_v18, %v149_v24 }
  0xf2   :  { %v162_v26 = vadd.f32 %v160_v23, %v158_v25 }
  0xf4   :  { %164 = vst.msk [vmem:[%s298_s4 + $0x8] sm:$0xff] %vm22_vm0, %v162_v26 }

// kernel: esm2_forward.21
= control target key start
LH: loop header
LB: loop body
LE: loop exit
PB: predicated region body
PF: predicated region fallthrough
CT: control target
= control target key end

     0   :  { %vm17_vm0 = vcmask 261120   ;;  %s156_s0 = inlined_call_operand.vmem [shape: f32[16,32], index: 0, kind: input, shape index: {}]   ;;  %s157_s1 = inlined_call_operand.vmem [shape: f32[1,32], index: 1, kind: input, shape index: {}]   ;;  %s158_s2 = inlined_call_operand.vmem [shape: f32[1,32], index: 2, kind: input, shape index: {}]   ;;  %s159_s3 = inlined_call_operand.hbm [shape: f32[16,32], index: 3, kind: output, shape index: {}]  }
   0x1   :  { %v15_v0 = vld [vmem:[%s156_s0] sm:$0xff]  ;;  %v16_v1 = vld [vmem:[%s156_s0 + $0x8] sm:$0xff] }
   0x2   :  { %8 = vsyncpa [#allocation3], 0  ;;  %v18_v2 = vsel %vm17_vm0, %v15_v0, 0.0  ;;  %v21_v3 = vsel %vm17_vm0, %v16_v1, 0.0  ;;  %v81_v21 = vld [vmem:[%s157_s1] ss:$0 sm:$0xff] }
   0x3   :  { %19 = vadd.xlane.f32.xlu0 %v18_v2  ;;  %v82_v23 = vld [vmem:[%s158_s2] ss:$0 sm:$0xff]  ;;  %s112_s19 = smov [#allocation2]  }
   0x4   :  { %s70_s20 = sshll.u32 %s112_s19, 4  ;;  %s71_s20 = int_to_ptr.vmem [resolvable:$true] %s70_s20 }
   0x5   :  { %s90_s21 = scalar_lea.vmem %s71_s20, 256  ;;  %p95_p1 = scmp.lt.s32.totalorder %s71_s20, %s71_s20 }
   0x6   :  { %p91_p0 = scmp.ne.s32.totalorder %s71_s20, %s90_s21  ;;  %p96_p2 = scmp.lt.s32.totalorder %s90_s21, %s90_s21 }
   0x7   :  { %22 = vadd.xlane.f32.xlu0 %v21_v3 }
   0x8   :  { %p97_p3 = por %p96_p2, %p95_p1 }
   0xa   :  { %p98_p4 = pnand %p97_p3, %p91_p0 }
  0x8c   :  { %v20_v4 = vpop.xlane.xlu0 %19 }
  0x8d   :  { %v25_v5 = vmul.f32 0.03125, %v20_v4 }
  0x8f   :  { %v27_v6 = vsub.f32 %v15_v0, %v25_v5 }
  0x90   :  { %v23_v7 = vpop.xlane.xlu0 %22 }
  0x91   :  { %v26_v8 = vmul.f32 0.03125, %v23_v7  ;;  %v29_v9 = vmul.f32 %v27_v6, %v27_v6 }
  0x93   :  { %v28_v10 = vsub.f32 %v16_v1, %v26_v8  ;;  %v31_v11 = vsel %vm17_vm0, %v29_v9, 0.0 }
  0x94   :  { %32 = vadd.xlane.f32.xlu1 %v31_v11 }
  0x95   :  { %v30_v12 = vmul.f32 %v28_v10, %v28_v10 }
  0x97   :  { %v34_v13 = vsel %vm17_vm0, %v30_v12, 0.0 }
  0x98   :  { %35 = vadd.xlane.f32.xlu1 %v34_v13 }
 0x11d   :  { %v33_v14 = vpop.xlane.xlu1 %32 }
 0x11e   :  { %v37_v15 = vmul.f32 0.03125, %v33_v14 }
 0x120   :  { %v39_v16 = vadd.f32 1e-05, %v37_v15 }
 0x121   :  { %v36_v17 = vpop.xlane.xlu1 %35 }
 0x122   :  { %86 = vrsqrt.f32 %v39_v16  ;;  %v38_v18 = vmul.f32 0.03125, %v36_v17 }
 0x124   :  { %v40_v19 = vadd.f32 1e-05, %v38_v18 }
 0x126   :  { %88 = vrsqrt.f32 %v40_v19 }
 0x12f   :  { %v87_v20 = vpop.eup %86 }
 0x130   :  { %v43_v22 = vmul.f32 %v87_v20, %v27_v6 }
 0x132   :  { %v52_v24 = vmul.f32 %v81_v21, %v43_v22 }
 0x133   :  { %v89_v25 = vpop.eup %88 }
 0x134   :  { %v44_v26 = vmul.f32 %v89_v25, %v28_v10  ;;  %v61_v27 = vadd.f32 %v82_v23, %v52_v24 }
 0x136   :  { %v53_v28 = vmul.f32 %v81_v21, %v44_v26  ;;  %63 = vst.msk [vmem:[#allocation2] sm:$0xff] %vm17_vm0, %v61_v27 }
 0x138   :  { %v62_v29 = vadd.f32 %v82_v23, %v53_v28 }
 0x13a   :  { %64 = vst.msk [vmem:[#allocation2 + $0x8] sm:$0xff] %vm17_vm0, %v62_v29 }
 0x13b   :  { %101 = shalt.err (!%p98_p4)
}
 0x13c   :  { %s113_s1 = smov 128   ;;  %s114_s2 = smov 8  }
 0x13d   :  { %76 = dma.vmem_to_hbm [thread:$0]  %s71_s20, 256, %s159_s3, [#allocation3], %s113_s1, %s113_s1, %s114_s2  }
 0x13e   :  { %110 = dma.done.wait [#allocation3], 256  }
 0x13f   :  { %111 = vsyncadd [#allocation3], 4294967040 }
 0x140   :  { %80 = vsyncpa [#allocation3], 1 }

</bundles_post_ra>
